<compile_context>
chip_gen: v7x
topology: tpu7x:2x2x1
jax: 0.10.0
libtpu: 0.0.40
codegen_flags: <defaults>
</compile_context>

<pallas_src>
import functools

import jax
import jax.numpy as jnp
from jax import lax
from jax.experimental import pallas as pl
from jax.experimental.pallas import tpu as pltpu


# ----------------------------- config ("args") -----------------------------
class Args:
    drop_rate = 0.2
    num_words_title = 8
    use_category = True
    use_subcategory = True
    category_emb_dim = 16
    news_dim = 32
    news_query_vector_dim = 16
    user_query_vector_dim = 16
    user_log_length = 8
    user_log_mask = False
    npratio = 4
    word_embedding_dim = 32
    freeze_embedding = True


def _round_up(x, m):
    return ((x + m - 1) // m) * m


def _choose_tile(n, tile_max, min_steps=2):
    """Largest row tile that keeps the grid >= min_steps (v7x 2nd TensorCore)
    while minimizing padded rows. tile % 8 == 0."""
    assert tile_max % 8 == 0 and tile_max >= 8
    steps = max(min_steps, -(-n // tile_max))
    tile = min(_round_up(-(-n // steps), 8), tile_max)
    steps = -(-n // tile)
    return tile, tile * steps


# --------------------- pure-JAX helpers (reference only) -------------------
def _mm3(x, w):
    n, s, d = x.shape
    y = jnp.dot(x.reshape(n * s, d), w, preferred_element_type=jnp.float32)
    return y.reshape(n, s, w.shape[1])


def _attn_pool(v, w1, b1, w2, b2):
    e = jnp.tanh(_mm3(v, w1) + b1[None])
    a = jnp.exp(_mm3(e, w2) + b2[None])
    a = a / (jnp.sum(a, axis=1, keepdims=True) + 1e-8)
    return jnp.sum(v * a, axis=1)


# ----------------------------- news encoder --------------------------------
def _news_encoder_kernel(T, D, Q, xw_ref, csv_ref, wbig_ref, wcs_ref, pool_ref,
                         vp_ref, out_ref):
    f32 = jnp.float32
    TD, TQ = T * D, T * Q
    CS = wcs_ref.shape[1]                       # 2*(D+Q)

    vp = vp_ref[...]                            # (8, >=T*D) f32 bias/vector slab
    ctx_b = vp[0:1, 0:TD]                       # conv bias, tiled over T
    attn_b = vp[1:2, 0:TQ]                      # (conv_b@W1 + b1), tiled over T
    w2_t = vp[2:3, 0:TQ]                        # attn fc2 weight, tiled over T
    cs_b = vp[3:4, 0:CS]                        # cat/sub (+folded attn) biases
    fb1 = vp[4:5, 0:Q]
    fw2 = vp[5:6, 0:Q]
    ab2 = vp[6:7, 0:1]
    fb2 = vp[6:7, 1:2]

    # --- fused banded Conv1d(k=3,pad=1) + title-attention fc1: ONE matmul ---
    big = jnp.dot(xw_ref[...], wbig_ref[...], preferred_element_type=f32)
    ctx = big[:, 0:TD] + ctx_b                  # (n, T*D), lane-dense
    e = jnp.tanh(big[:, TD:TD + TQ] + attn_b)   # (n, T*Q)
    m = e * w2_t                                # attn fc2 as broadcast-mul

    # per-position logits: block-sum over the Q lanes of each position
    ri = lax.broadcasted_iota(jnp.int32, (TQ, T), 0)
    ci = lax.broadcasted_iota(jnp.int32, (TQ, T), 1)
    blk_q = ((ri >= ci * Q) & (ri < (ci + 1) * Q)).astype(f32)
    z = jnp.dot(m, blk_q, preferred_element_type=f32) + ab2      # (n, T)

    zmax = jnp.max(z, axis=-1, keepdims=True)                    # stabilized exp
    a = jnp.exp(z - zmax)
    inv_den = 1.0 / (jnp.sum(a, axis=-1, keepdims=True) + 1e-8)

    # broadcast a[t] over the D lanes of position t, then pool (+ title fc1)
    rj = lax.broadcasted_iota(jnp.int32, (T, TD), 0)
    cj = lax.broadcasted_iota(jnp.int32, (T, TD), 1)
    rep_d = ((cj >= rj * D) & (cj < (rj + 1) * D)).astype(f32)
    a_full = jnp.dot(a, rep_d, preferred_element_type=f32)       # (n, T*D)
    pooled = jnp.dot(ctx * a_full, pool_ref[...],
                     preferred_element_type=f32)                 # (n, D+Q)
    title_vec = pooled[:, 0:D] * inv_den
    e_t = jnp.tanh(pooled[:, D:D + Q] * inv_den + fb1)

    # --- category + subcategory dense (+ folded final-attn fc1 columns) ----
    cs = jnp.dot(csv_ref[...], wcs_ref[...], preferred_element_type=f32) + cs_b
    cat_vec = cs[:, 0:D]
    sub_vec = cs[:, D:2 * D]
    e_c = jnp.tanh(cs[:, 2 * D:2 * D + Q])
    e_s = jnp.tanh(cs[:, 2 * D + Q:2 * D + 2 * Q])

    # --- final attention over {title, cat, sub} -----------------------------
    z_t = jnp.sum(e_t * fw2, axis=-1, keepdims=True) + fb2
    z_c = jnp.sum(e_c * fw2, axis=-1, keepdims=True) + fb2
    z_s = jnp.sum(e_s * fw2, axis=-1, keepdims=True) + fb2
    zm = jnp.maximum(jnp.maximum(z_t, z_c), z_s)
    a_t = jnp.exp(z_t - zm)
    a_c = jnp.exp(z_c - zm)
    a_s = jnp.exp(z_s - zm)
    denom = a_t + a_c + a_s + 1e-8
    news_vec = (a_t * title_vec + a_c * cat_vec + a_s * sub_vec) / denom
    out_ref[...] = news_vec.astype(out_ref.dtype)


def _pack_news_weights(p, args, dtype):
    T, E = args.num_words_title, args.word_embedding_dim
    D, C, Q = args.news_dim, args.category_emb_dim, args.news_query_vector_dim
    conv_w, attn_w1, fattn_w1 = p['conv_w'], p['attn_w1'], p['fattn_w1']

    # block-banded conv weight (absorbs padding=1) + fused title-attn fc1 cols
    w_band = jnp.zeros((T * E, T * D), jnp.float32)
    w_abnd = jnp.zeros((T * E, T * Q), jnp.float32)
    cwa = [conv_w[k] @ attn_w1 for k in range(3)]
    for t in range(T):
        for k in range(3):
            s = t - 1 + k
            if 0 <= s < T:
                w_band = w_band.at[s * E:(s + 1) * E,
                                   t * D:(t + 1) * D].set(conv_w[k])
                w_abnd = w_abnd.at[s * E:(s + 1) * E,
                                   t * Q:(t + 1) * Q].set(cwa[k])
    w_big = jnp.concatenate([w_band, w_abnd], axis=1).astype(dtype)  # (T*E, T*(D+Q))

    # block-diag cat/sub dense + folded final-attn fc1 columns
    w_cs = jnp.zeros((2 * C, 2 * (D + Q)), jnp.float32)
    w_cs = w_cs.at[:C, 0:D].set(p['cat_w'])
    w_cs = w_cs.at[C:, D:2 * D].set(p['sub_w'])
    w_cs = w_cs.at[:C, 2 * D:2 * D + Q].set(p['cat_w'] @ fattn_w1)
    w_cs = w_cs.at[C:, 2 * D + Q:].set(p['sub_w'] @ fattn_w1)
    w_cs = w_cs.astype(dtype)

    # title pooling matrix: [block-sum over positions | block-sum @ fattn_w1]
    pool = jnp.concatenate(
        [jnp.tile(jnp.eye(D, dtype=jnp.float32), (T, 1)),
         jnp.tile(fattn_w1.astype(jnp.float32), (T, 1))], axis=1)    # (T*D, D+Q)

    # bias / small-vector slab (kept f32)
    vw = max(T * D, T * Q, 2 * (D + Q), Q, 2)
    conv_b = p['conv_b'][0]
    attn_b_row = conv_b @ attn_w1 + p['attn_b1'][0]
    cs_b = jnp.concatenate(
        [p['cat_b'][0], p['sub_b'][0],
         p['cat_b'][0] @ fattn_w1 + p['fattn_b1'][0],
         p['sub_b'][0] @ fattn_w1 + p['fattn_b1'][0]])
    vp = jnp.zeros((8, vw), jnp.float32)
    vp = vp.at[0, :T * D].set(jnp.tile(conv_b, T))
    vp = vp.at[1, :T * Q].set(jnp.tile(attn_b_row, T))
    vp = vp.at[2, :T * Q].set(jnp.tile(p['attn_w2'][:, 0], T))
    vp = vp.at[3, :2 * (D + Q)].set(cs_b)
    vp = vp.at[4, :Q].set(p['fattn_b1'][0])
    vp = vp.at[5, :Q].set(p['fattn_w2'][:, 0])
    vp = vp.at[6, 0].set(p['attn_b2'][0, 0])
    vp = vp.at[6, 1].set(p['fattn_b2'][0, 0])
    return w_big, w_cs, pool, vp


def news_encode(x_ids, p, args, *, tile_n=1024, compute_dtype=jnp.bfloat16):
    """x_ids: (N, num_words_title + 2) int32 -> (N, news_dim) f32."""
    T, E = args.num_words_title, args.word_embedding_dim
    D, C, Q = args.news_dim, args.category_emb_dim, args.news_query_vector_dim
    N = x_ids.shape[0]

    title = x_ids[:, :T]
    cat = x_ids[:, T]
    sub = x_ids[:, T + 1]

    # glue: embedding gathers; titles streamed ONCE as a flat lane-dense row
    # (no im2col duplication -- conv padding handled by the banded weight).
    xw = p['word_emb'].astype(compute_dtype)[title].reshape(N, T * E)
    csv = jnp.concatenate(
        [p['cat_emb'].astype(compute_dtype)[cat],
         p['sub_emb'].astype(compute_dtype)[sub]], axis=-1)          # (N, 2C)

    w_big, w_cs, pool, vp = _pack_news_weights(p, args, compute_dtype)

    tile, Np = _choose_tile(N, tile_n)
    xw = jnp.pad(xw, ((0, Np - N), (0, 0)))
    csv = jnp.pad(csv, ((0, Np - N), (0, 0)))

    const = lambda i: (0, 0)
    out = pl.pallas_call(
        functools.partial(_news_encoder_kernel, T, D, Q),
        out_shape=jax.ShapeDtypeStruct((Np, D), jnp.float32),
        grid=(Np // tile,),
        in_specs=[
            pl.BlockSpec((tile, T * E), lambda i: (i, 0)),
            pl.BlockSpec((tile, 2 * C), lambda i: (i, 0)),
            pl.BlockSpec(w_big.shape, const),
            pl.BlockSpec(w_cs.shape, const),
            pl.BlockSpec(pool.shape, const),
            pl.BlockSpec(vp.shape, const),
        ],
        # TODO(synk): on v5e only, if profiling shows masked-store writeback
        # stalls, pack 4 news vectors per 128-lane output row (unpack in JAX).
        out_specs=pl.BlockSpec((tile, D), lambda i: (i, 0)),
        compiler_params=pltpu.CompilerParams(
            dimension_semantics=("parallel",),
            vmem_limit_bytes=48 * 1024 * 1024),
    )(xw, csv, w_big, w_cs, pool, vp)
    return out[:N]


# --------------------- user encoder + scoring + loss -----------------------
def _user_scoring_kernel(L, D, Qu, hist_ref, mask_ref, cand_ref, label_ref,
                         wu_ref, vu_ref, score_ref, loss_ref, xg_s):
    f32 = jnp.float32
    tb = mask_ref.shape[0]

    vu = vu_ref[...]                              # (8, >=3D) bias/vector slab
    bih = vu[0:1, 0:3 * D]
    bhh = vu[1:2, 0:3 * D]
    gb1 = vu[2:3, 0:Qu]
    gw2 = vu[3:4, 0:Qu]
    ln_g = vu[4:5, 0:D]
    ln_b = vu[5:6, 0:D]
    pad = vu[6:7, 0:D]
    gb2 = vu[7:8, 0:1]
    alpha = vu[7:8, 1:2]
    wu = wu_ref[...]                              # (D, 6D+Qu) weight slab
    wih = wu[:, 0:3 * D]
    whh = wu[:, 3 * D:6 * D]
    gw1 = wu[:, 6 * D:6 * D + Qu]

    nv = hist_ref[...]                            # (L, tb, D) time-major
    m = mask_ref[...].T[:, :, None]               # (L, tb, 1)
    mixed = nv * m + pad[None] * (1.0 - m)        # user_log_mask=False path
    mixed_flat = mixed.reshape(L * tb, D)

    # long-term interest: attention pooling (fc2 as lane reduction)
    eg = jnp.tanh(jnp.dot(mixed_flat, gw1, preferred_element_type=f32) + gb1)
    zg = (jnp.sum(eg * gw2, axis=-1, keepdims=True) + gb2).reshape(L, tb, 1)
    ag = jnp.exp(zg - jnp.max(zg, axis=0, keepdims=True))
    long_vec = jnp.sum(mixed * ag, axis=0) / (jnp.sum(ag, axis=0) + 1e-8)

    # GRU: all input gates in one matmul -> VMEM scratch; h carried through a
    # fori_loop so only one step's gates are live at a time.
    # TODO(synk): pin whh in MXU weight registers via pltpu.matmul_push_rhs.
    xg_s[...] = jnp.dot(mixed_flat, wih, preferred_element_type=f32) + bih

    def gru_step(t, h):
        start = pl.multiple_of(t * tb, 8)
        gx = xg_s[pl.ds(start, tb), :]            # contiguous: step t, all rows
        gh = jnp.dot(h, whh, preferred_element_type=f32) + bhh
        r = jax.nn.sigmoid(gx[:, 0:D] + gh[:, 0:D])
        u = jax.nn.sigmoid(gx[:, D:2 * D] + gh[:, D:2 * D])
        c = jnp.tanh(gx[:, 2 * D:3 * D] + r * gh[:, 2 * D:3 * D])
        return (1.0 - u) * c + u * h

    h = lax.fori_loop(0, L, gru_step, jnp.zeros((tb, D), f32), unroll=True)

    # LayerNorm on the final GRU state (only the last step is consumed)
    mu = jnp.mean(h, axis=-1, keepdims=True)
    var = jnp.mean((h - mu) ** 2, axis=-1, keepdims=True)
    short_vec = (h - mu) * lax.rsqrt(var + 1e-5) * ln_g + ln_b

    user_vec = alpha * long_vec + (1.0 - alpha) * short_vec          # (tb, D)

    score = jnp.sum(cand_ref[...] * user_vec[:, None, :], axis=-1)   # (tb, K1)
    score_ref[...] = score.astype(score_ref.dtype)

    # per-row cross-entropy partials; mean over the real batch wrapper-side
    smax = jnp.max(score, axis=-1, keepdims=True)
    lse = smax + jnp.log(jnp.sum(jnp.exp(score - smax), axis=-1, keepdims=True))
    loss_ref[...] = -jnp.sum(label_ref[...] * (score - lse), axis=-1,
                             keepdims=True)


def _pack_user_weights(p, args):
    D, Qu = args.news_dim, args.user_query_vector_dim
    wu = jnp.concatenate([p['gru_wih'], p['gru_whh'], p['g_w1']],
                         axis=1).astype(jnp.float32)          # (D, 6D+Qu)
    vw = max(3 * D, Qu, D, 2)
    vu = jnp.zeros((8, vw), jnp.float32)
    vu = vu.at[0, :3 * D].set(p['gru_bih'][0])
    vu = vu.at[1, :3 * D].set(p['gru_bhh'][0])
    vu = vu.at[2, :Qu].set(p['g_b1'][0])
    vu = vu.at[3, :Qu].set(p['g_w2'][:, 0])
    vu = vu.at[4, :D].set(p['ln_g'][0])
    vu = vu.at[5, :D].set(p['ln_b'][0])
    vu = vu.at[6, :D].set(p['pad_doc'][0])
    vu = vu.at[7, 0].set(p['g_b2'][0, 0])
    vu = vu.at[7, 1].set(p['alpha'][0, 0])
    return wu, vu


def user_encode_and_score(hist_vecs, log_mask, cand_vecs, label, p, args, *,
                          tile_b=256):
    B, L, D = hist_vecs.shape
    K1 = cand_vecs.shape[1]
    Qu = args.user_query_vector_dim

    tb, Bp = _choose_tile(B, tile_b)
    bp = Bp - B
    hist_t = jnp.pad(jnp.transpose(hist_vecs, (1, 0, 2)),       # (L, Bp, D)
                     ((0, 0), (0, bp), (0, 0)))                 # time-major
    mask_p = jnp.pad(log_mask, ((0, bp), (0, 0)))
    cand_p = jnp.pad(cand_vecs, ((0, bp), (0, 0), (0, 0)))
    label_p = jnp.pad(label, ((0, bp), (0, 0)))
    wu, vu = _pack_user_weights(p, args)

    const = lambda i: (0, 0)
    score, loss_rows = pl.pallas_call(
        functools.partial(_user_scoring_kernel, L, D, Qu),
        out_shape=(jax.ShapeDtypeStruct((Bp, K1), jnp.float32),
                   jax.ShapeDtypeStruct((Bp, 1), jnp.float32)),
        grid=(Bp // tb,),
        in_specs=[
            pl.BlockSpec((L, tb, D), lambda i: (0, i, 0)),
            pl.BlockSpec((tb, L), lambda i: (i, 0)),
            pl.BlockSpec((tb, K1, D), lambda i: (i, 0, 0)),
            pl.BlockSpec((tb, K1), lambda i: (i, 0)),
            pl.BlockSpec(wu.shape, const),
            pl.BlockSpec(vu.shape, const),
        ],
        out_specs=(pl.BlockSpec((tb, K1), lambda i: (i, 0)),
                   pl.BlockSpec((tb, 1), lambda i: (i, 0))),
        scratch_shapes=[pltpu.VMEM((L * tb, 3 * D), jnp.float32)],
        compiler_params=pltpu.CompilerParams(
            dimension_semantics=("parallel",),
            vmem_limit_bytes=48 * 1024 * 1024),
    )(hist_t, mask_p, cand_p, label_p, wu, vu)

    loss = jnp.sum(loss_rows[:B, 0]) / B
    return loss, score[:B]


# ------------------------------ full model ---------------------------------
def model_forward(history, history_mask, candidate, label, p, args, *,
                  tile_n=1024, tile_b=256, compute_dtype=jnp.bfloat16):
    B, L = history.shape[0], history.shape[1]
    K1 = candidate.shape[1]
    nw = history.shape[-1]
    D = args.news_dim
    # ONE fused news-encoder pallas_call for candidates + history
    all_ids = jnp.concatenate(
        [candidate.reshape(-1, nw), history.reshape(-1, nw)], axis=0)
    all_vecs = news_encode(all_ids, p, args, tile_n=tile_n,
                           compute_dtype=compute_dtype)
    cand_vecs = all_vecs[:B * K1].reshape(B, K1, D)
    hist_vecs = all_vecs[B * K1:].reshape(B, L, D)
    return user_encode_and_score(hist_vecs, history_mask, cand_vecs, label,
                                 p, args, tile_b=tile_b)


# --------------------------- pure-JAX reference -----------------------------
def ref_forward(history, history_mask, candidate, label, p, args):
    T = args.num_words_title
    D = args.news_dim
    B = history.shape[0]

    def ref_news(x_ids):
        wv = p['word_emb'][x_ids[:, :T]]
        wvp = jnp.pad(wv, ((0, 0), (1, 1), (0, 0)))
        wk = p['conv_w']
        ctx = (_mm3(wvp[:, 0:T, :], wk[0]) + _mm3(wvp[:, 1:T + 1, :], wk[1])
               + _mm3(wvp[:, 2:T + 2, :], wk[2]) + p['conv_b'][None])
        title_vec = _attn_pool(ctx, p['attn_w1'], p['attn_b1'],
                               p['attn_w2'], p['attn_b2'])
        cat_vec = p['cat_emb'][x_ids[:, T]] @ p['cat_w'] + p['cat_b']
        sub_vec = p['sub_emb'][x_ids[:, T + 1]] @ p['sub_w'] + p['sub_b']
        stacked = jnp.stack([title_vec, cat_vec, sub_vec], axis=1)
        return _attn_pool(stacked, p['fattn_w1'], p['fattn_b1'],
                          p['fattn_w2'], p['fattn_b2'])

    nw = history.shape[-1]
    cand_vecs = ref_news(candidate.reshape(-1, nw)).reshape(B, 1 + args.npratio, D)
    hist_vecs = ref_news(history.reshape(-1, nw)).reshape(B, args.user_log_length, D)

    m = history_mask[..., None]
    mixed = hist_vecs * m + p['pad_doc'][None] * (1.0 - m)
    long_vec = _attn_pool(mixed, p['g_w1'], p['g_b1'], p['g_w2'], p['g_b2'])
    xg = _mm3(mixed, p['gru_wih']) + p['gru_bih'][None]
    h = jnp.zeros((B, D), jnp.float32)
    for t in range(args.user_log_length):
        gx = xg[:, t, :]
        gh = h @ p['gru_whh'] + p['gru_bhh']
        r = jax.nn.sigmoid(gx[:, :D] + gh[:, :D])
        z = jax.nn.sigmoid(gx[:, D:2 * D] + gh[:, D:2 * D])
        n = jnp.tanh(gx[:, 2 * D:] + r * gh[:, 2 * D:])
        h = (1.0 - z) * n + z * h
    mu = h.mean(-1, keepdims=True)
    var = ((h - mu) ** 2).mean(-1, keepdims=True)
    short_vec = (h - mu) * jax.lax.rsqrt(var + 1e-5) * p['ln_g'] + p['ln_b']
    a = p['alpha'][0, 0]
    uv = a * long_vec + (1.0 - a) * short_vec
    score = jnp.sum(cand_vecs * uv[:, None, :], axis=-1)
    smax = score.max(-1, keepdims=True)
    logp = score - (smax + jnp.log(jnp.sum(jnp.exp(score - smax), -1, keepdims=True)))
    loss = -jnp.mean(jnp.sum(label * logp, axis=-1))
    return loss, score


# ------------------------------- params ------------------------------------
def init_params(key, args, vocab_size, num_category, num_subcategory):
    E, D, C = args.word_embedding_dim, args.news_dim, args.category_emb_dim
    Q, Qu = args.news_query_vector_dim, args.user_query_vector_dim
    ks = iter(jax.random.split(key, 40))

    def nrm(shape, scale=0.1):
        return (scale * jax.random.normal(next(ks), shape)).astype(jnp.float32)

    p = {}
    p['word_emb'] = nrm((vocab_size, E)).at[0].set(0.0)            # padding_idx=0
    p['cat_emb'] = nrm((num_category + 1, C)).at[0].set(0.0)       # padding_idx=0
    p['sub_emb'] = nrm((num_subcategory + 1, C)).at[0].set(0.0)    # padding_idx=0
    p['conv_w'] = nrm((3, E, D))      # torch Conv1d weight (D, E, 3) as W[:,:,k].T
    p['conv_b'] = nrm((1, D))
    p['attn_w1'], p['attn_b1'] = nrm((D, Q)), nrm((1, Q))
    p['attn_w2'], p['attn_b2'] = nrm((Q, 1)), nrm((1, 1))
    p['cat_w'], p['cat_b'] = nrm((C, D)), nrm((1, D))
    p['sub_w'], p['sub_b'] = nrm((C, D)), nrm((1, D))
    p['fattn_w1'], p['fattn_b1'] = nrm((D, Q)), nrm((1, Q))
    p['fattn_w2'], p['fattn_b2'] = nrm((Q, 1)), nrm((1, 1))
    p['g_w1'], p['g_b1'] = nrm((D, Qu)), nrm((1, Qu))
    p['g_w2'], p['g_b2'] = nrm((Qu, 1)), nrm((1, 1))
    p['gru_wih'], p['gru_whh'] = nrm((D, 3 * D)), nrm((D, 3 * D))  # [r|z|n] transposed
    p['gru_bih'], p['gru_bhh'] = nrm((1, 3 * D)), nrm((1, 3 * D))
    p['ln_g'] = jnp.ones((1, D), jnp.float32)
    p['ln_b'] = jnp.zeros((1, D), jnp.float32)
    p['alpha'] = jnp.full((1, 1), 0.5, jnp.float32)
    p['pad_doc'] = (2.0 * jax.random.uniform(next(ks), (1, D)) - 1.0).astype(jnp.float32)
    return p


# --------------------------------- main -------------------------------------
if __name__ == "__main__":
    args = Args()
    B = 2
    vocab = 50
    num_cat, num_sub = 10, 12
    T = args.num_words_title

    key = jax.random.PRNGKey(0)
    kp, k1, k2, k3, k4 = jax.random.split(key, 5)
    p = init_params(kp, args, vocab, num_cat, num_sub)

    def make_news(k, lead_shape):
        ka, kb, kc = jax.random.split(k, 3)
        title = jax.random.randint(ka, lead_shape + (T,), 0, vocab)
        cat = jax.random.randint(kb, lead_shape + (1,), 0, num_cat + 1)
        sub = jax.random.randint(kc, lead_shape + (1,), 0, num_sub + 1)
        return jnp.concatenate([title, cat, sub], axis=-1).astype(jnp.int32)

    history = make_news(k1, (B, args.user_log_length))              # (2, 8, 10)
    candidate = make_news(k2, (B, 1 + args.npratio))                 # (2, 5, 10)
    hist_len = jax.random.randint(k3, (B,), 1, args.user_log_length + 1)
    history_mask = (jnp.arange(args.user_log_length)[None, :]
                    < hist_len[:, None]).astype(jnp.float32)         # (2, 8)
    label = jax.nn.one_hot(jax.random.randint(k4, (B,), 0, 1 + args.npratio),
                           1 + args.npratio, dtype=jnp.float32)      # (2, 5)

    ref_loss, ref_score = ref_forward(history, history_mask, candidate, label,
                                      p, args)

    # f32 streaming path: tight parity with the reference
    loss32, score32 = jax.block_until_ready(
        model_forward(history, history_mask, candidate, label, p, args,
                      compute_dtype=jnp.float32))
    # bf16 streaming path (default): halves HBM bytes of the dominant stream
    loss16, score16 = jax.block_until_ready(
        model_forward(history, history_mask, candidate, label, p, args))

    assert bool(jnp.all(jnp.isfinite(score32))) and bool(jnp.isfinite(loss32))
    assert bool(jnp.all(jnp.isfinite(score16))) and bool(jnp.isfinite(loss16))
    assert jnp.allclose(score32, ref_score, atol=2e-2, rtol=2e-2), (score32, ref_score)
    assert jnp.allclose(loss32, ref_loss, atol=2e-2, rtol=2e-2), (loss32, ref_loss)
    assert jnp.allclose(score16, ref_score, atol=5e-2, rtol=5e-2), (score16, ref_score)
    assert jnp.allclose(loss16, ref_loss, atol=5e-2, rtol=5e-2), (loss16, ref_loss)

    print("KERNEL_OK")
</pallas_src>

<mosaic_0001>
module attributes {stable_mosaic.version = 11 : i64} {
  func.func @_news_encoder_kernel(%arg0: i32, %arg1: memref<16x256xf32, #tpu.memory_space<vmem>>, %arg2: memref<16x32xf32, #tpu.memory_space<vmem>>, %arg3: memref<256x384xf32, #tpu.memory_space<vmem>>, %arg4: memref<32x96xf32, #tpu.memory_space<vmem>>, %arg5: memref<256x48xf32, #tpu.memory_space<vmem>>, %arg6: memref<8x256xf32, #tpu.memory_space<vmem>>, %arg7: memref<16x32xf32, #tpu.memory_space<vmem>>) attributes {dimension_semantics = [#tpu.dimension_semantics<parallel>], iteration_bounds = array<i64: 2>, scalar_prefetch = 0 : i64, scratch_operands = 0 : i64, tpu.core_type = #tpu.core_type<tc>, window_params = [{transform_indices = @transform_0, window_bounds = array<i64: 16, 256>}, {transform_indices = @transform_1, window_bounds = array<i64: 16, 32>}, {pipeline_mode = #tpu.pipeline_mode<synchronous>, transform_indices = @transform_2, window_bounds = array<i64: 256, 384>}, {pipeline_mode = #tpu.pipeline_mode<synchronous>, transform_indices = @transform_3, window_bounds = array<i64: 32, 96>}, {pipeline_mode = #tpu.pipeline_mode<synchronous>, transform_indices = @transform_4, window_bounds = array<i64: 256, 48>}, {pipeline_mode = #tpu.pipeline_mode<synchronous>, transform_indices = @transform_5, window_bounds = array<i64: 8, 256>}, {transform_indices = @transform_6, window_bounds = array<i64: 16, 32>}]} {
    %c0 = arith.constant 0 : index
    %c0_0 = arith.constant 0 : index
    %0 = vector.load %arg6[%c0, %c0_0] : memref<8x256xf32, #tpu.memory_space<vmem>>, vector<8x256xf32>
    %1 = vector.extract_strided_slice %0 {offsets = [0, 0], sizes = [1, 256], strides = [1, 1]} : vector<8x256xf32> to vector<1x256xf32>
    %2 = vector.extract_strided_slice %0 {offsets = [1, 0], sizes = [1, 128], strides = [1, 1]} : vector<8x256xf32> to vector<1x128xf32>
    %3 = vector.extract_strided_slice %0 {offsets = [2, 0], sizes = [1, 128], strides = [1, 1]} : vector<8x256xf32> to vector<1x128xf32>
    %4 = vector.extract_strided_slice %0 {offsets = [3, 0], sizes = [1, 96], strides = [1, 1]} : vector<8x256xf32> to vector<1x96xf32>
    %5 = vector.extract_strided_slice %0 {offsets = [4, 0], sizes = [1, 16], strides = [1, 1]} : vector<8x256xf32> to vector<1x16xf32>
    %6 = vector.extract_strided_slice %0 {offsets = [5, 0], sizes = [1, 16], strides = [1, 1]} : vector<8x256xf32> to vector<1x16xf32>
    %7 = vector.extract_strided_slice %0 {offsets = [6, 0], sizes = [1, 1], strides = [1, 1]} : vector<8x256xf32> to vector<1x1xf32>
    %8 = vector.extract_strided_slice %0 {offsets = [6, 1], sizes = [1, 1], strides = [1, 1]} : vector<8x256xf32> to vector<1x1xf32>
    %c0_1 = arith.constant 0 : index
    %c0_2 = arith.constant 0 : index
    %9 = vector.load %arg1[%c0_1, %c0_2] : memref<16x256xf32, #tpu.memory_space<vmem>>, vector<16x256xf32>
    %c0_3 = arith.constant 0 : index
    %c0_4 = arith.constant 0 : index
    %10 = vector.load %arg3[%c0_3, %c0_4] : memref<256x384xf32, #tpu.memory_space<vmem>>, vector<256x384xf32>
    %cst = arith.constant dense<0.000000e+00> : vector<16x384xf32>
    %11 = tpu.matmul %9, %10, %cst {dimension_numbers = #tpu.dot_dimension_numbers<[1], [0], [0], [1], [0, 0, 1, 1], [], []>} : vector<16x256xf32>, vector<256x384xf32>, vector<16x384xf32> -> vector<16x384xf32>
    %12 = vector.extract_strided_slice %11 {offsets = [0, 0], sizes = [16, 256], strides = [1, 1]} : vector<16x384xf32> to vector<16x256xf32>
    %13 = vector.broadcast %1 : vector<1x256xf32> to vector<16x256xf32>
    %14 = arith.addf %12, %13 : vector<16x256xf32>
    %15 = vector.extract_strided_slice %11 {offsets = [0, 256], sizes = [16, 128], strides = [1, 1]} : vector<16x384xf32> to vector<16x128xf32>
    %16 = vector.broadcast %2 : vector<1x128xf32> to vector<16x128xf32>
    %17 = arith.addf %15, %16 : vector<16x128xf32>
    %18 = math.tanh %17 : vector<16x128xf32>
    %19 = vector.broadcast %3 : vector<1x128xf32> to vector<16x128xf32>
    %20 = arith.mulf %18, %19 : vector<16x128xf32>
    %21 = tpu.iota {dimensions = array<i32: 0>} : vector<128x8xi32>
    %22 = tpu.iota {dimensions = array<i32: 1>} : vector<128x8xi32>
    %c16_i32 = arith.constant 16 : i32
    %23 = vector.broadcast %c16_i32 : i32 to vector<128x8xi32>
    %24 = arith.muli %22, %23 : vector<128x8xi32>
    %25 = arith.cmpi sge, %21, %24 : vector<128x8xi32>
    %c1_i32 = arith.constant 1 : i32
    %26 = vector.broadcast %c1_i32 : i32 to vector<128x8xi32>
    %27 = arith.addi %22, %26 : vector<128x8xi32>
    %c16_i32_5 = arith.constant 16 : i32
    %28 = vector.broadcast %c16_i32_5 : i32 to vector<128x8xi32>
    %29 = arith.muli %27, %28 : vector<128x8xi32>
    %30 = arith.cmpi slt, %21, %29 : vector<128x8xi32>
    %31 = arith.andi %25, %30 : vector<128x8xi1>
    %32 = arith.extui %31 : vector<128x8xi1> to vector<128x8xi32>
    %33 = arith.sitofp %32 : vector<128x8xi32> to vector<128x8xf32>
    %cst_6 = arith.constant dense<0.000000e+00> : vector<16x8xf32>
    %34 = tpu.matmul %20, %33, %cst_6 {dimension_numbers = #tpu.dot_dimension_numbers<[1], [0], [0], [1], [0, 0, 1, 1], [], []>} : vector<16x128xf32>, vector<128x8xf32>, vector<16x8xf32> -> vector<16x8xf32>
    %35 = vector.broadcast %7 : vector<1x1xf32> to vector<16x8xf32>
    %36 = arith.addf %34, %35 : vector<16x8xf32>
    %cst_7 = arith.constant dense<0xFF800000> : vector<16xf32>
    %37 = vector.multi_reduction <maximumf>, %36, %cst_7 [1] : vector<16x8xf32> to vector<16xf32>
    %38 = vector.shape_cast %37 : vector<16xf32> to vector<16x1xf32>
    %39 = vector.broadcast %38 : vector<16x1xf32> to vector<16x8xf32>
    %40 = arith.subf %36, %39 : vector<16x8xf32>
    %41 = math.exp %40 : vector<16x8xf32>
    %cst_8 = arith.constant dense<0.000000e+00> : vector<16xf32>
    %42 = vector.multi_reduction <add>, %41, %cst_8 [1] : vector<16x8xf32> to vector<16xf32>
    %43 = vector.shape_cast %42 : vector<16xf32> to vector<16x1xf32>
    %cst_9 = arith.constant 9.99999993E-9 : f32
    %44 = vector.broadcast %cst_9 : f32 to vector<16x1xf32>
    %45 = arith.addf %43, %44 : vector<16x1xf32>
    %cst_10 = arith.constant 1.000000e+00 : f32
    %46 = vector.broadcast %cst_10 : f32 to vector<16x1xf32>
    %47 = arith.divf %46, %45 : vector<16x1xf32>
    %48 = tpu.iota {dimensions = array<i32: 0>} : vector<8x256xi32>
    %49 = tpu.iota {dimensions = array<i32: 1>} : vector<8x256xi32>
    %c32_i32 = arith.constant 32 : i32
    %50 = vector.broadcast %c32_i32 : i32 to vector<8x256xi32>
    %51 = arith.muli %48, %50 : vector<8x256xi32>
    %52 = arith.cmpi sge, %49, %51 : vector<8x256xi32>
    %c1_i32_11 = arith.constant 1 : i32
    %53 = vector.broadcast %c1_i32_11 : i32 to vector<8x256xi32>
    %54 = arith.addi %48, %53 : vector<8x256xi32>
    %c32_i32_12 = arith.constant 32 : i32
    %55 = vector.broadcast %c32_i32_12 : i32 to vector<8x256xi32>
    %56 = arith.muli %54, %55 : vector<8x256xi32>
    %57 = arith.cmpi slt, %49, %56 : vector<8x256xi32>
    %58 = arith.andi %52, %57 : vector<8x256xi1>
    %59 = arith.extui %58 : vector<8x256xi1> to vector<8x256xi32>
    %60 = arith.sitofp %59 : vector<8x256xi32> to vector<8x256xf32>
    %cst_13 = arith.constant dense<0.000000e+00> : vector<16x256xf32>
    %61 = tpu.matmul %41, %60, %cst_13 {dimension_numbers = #tpu.dot_dimension_numbers<[1], [0], [0], [1], [0, 0, 1, 1], [], []>} : vector<16x8xf32>, vector<8x256xf32>, vector<16x256xf32> -> vector<16x256xf32>
    %62 = arith.mulf %14, %61 : vector<16x256xf32>
    %c0_14 = arith.constant 0 : index
    %c0_15 = arith.constant 0 : index
    %63 = vector.load %arg5[%c0_14, %c0_15] : memref<256x48xf32, #tpu.memory_space<vmem>>, vector<256x48xf32>
    %cst_16 = arith.constant dense<0.000000e+00> : vector<16x48xf32>
    %64 = tpu.matmul %62, %63, %cst_16 {dimension_numbers = #tpu.dot_dimension_numbers<[1], [0], [0], [1], [0, 0, 1, 1], [], []>} : vector<16x256xf32>, vector<256x48xf32>, vector<16x48xf32> -> vector<16x48xf32>
    %65 = vector.extract_strided_slice %64 {offsets = [0, 0], sizes = [16, 32], strides = [1, 1]} : vector<16x48xf32> to vector<16x32xf32>
    %66 = vector.broadcast %47 : vector<16x1xf32> to vector<16x32xf32>
    %67 = arith.mulf %65, %66 : vector<16x32xf32>
    %68 = vector.extract_strided_slice %64 {offsets = [0, 32], sizes = [16, 16], strides = [1, 1]} : vector<16x48xf32> to vector<16x16xf32>
    %69 = vector.broadcast %47 : vector<16x1xf32> to vector<16x16xf32>
    %70 = arith.mulf %68, %69 : vector<16x16xf32>
    %71 = vector.broadcast %5 : vector<1x16xf32> to vector<16x16xf32>
    %72 = arith.addf %70, %71 : vector<16x16xf32>
    %73 = math.tanh %72 : vector<16x16xf32>
    %c0_17 = arith.constant 0 : index
    %c0_18 = arith.constant 0 : index
    %74 = vector.load %arg2[%c0_17, %c0_18] : memref<16x32xf32, #tpu.memory_space<vmem>>, vector<16x32xf32>
    %c0_19 = arith.constant 0 : index
    %c0_20 = arith.constant 0 : index
    %75 = vector.load %arg4[%c0_19, %c0_20] : memref<32x96xf32, #tpu.memory_space<vmem>>, vector<32x96xf32>
    %cst_21 = arith.constant dense<0.000000e+00> : vector<16x96xf32>
    %76 = tpu.matmul %74, %75, %cst_21 {dimension_numbers = #tpu.dot_dimension_numbers<[1], [0], [0], [1], [0, 0, 1, 1], [], []>} : vector<16x32xf32>, vector<32x96xf32>, vector<16x96xf32> -> vector<16x96xf32>
    %77 = vector.broadcast %4 : vector<1x96xf32> to vector<16x96xf32>
    %78 = arith.addf %76, %77 : vector<16x96xf32>
    %79 = vector.extract_strided_slice %78 {offsets = [0, 0], sizes = [16, 32], strides = [1, 1]} : vector<16x96xf32> to vector<16x32xf32>
    %80 = vector.extract_strided_slice %78 {offsets = [0, 32], sizes = [16, 32], strides = [1, 1]} : vector<16x96xf32> to vector<16x32xf32>
    %81 = vector.extract_strided_slice %78 {offsets = [0, 64], sizes = [16, 16], strides = [1, 1]} : vector<16x96xf32> to vector<16x16xf32>
    %82 = math.tanh %81 : vector<16x16xf32>
    %83 = vector.extract_strided_slice %78 {offsets = [0, 80], sizes = [16, 16], strides = [1, 1]} : vector<16x96xf32> to vector<16x16xf32>
    %84 = math.tanh %83 : vector<16x16xf32>
    %85 = vector.broadcast %6 : vector<1x16xf32> to vector<16x16xf32>
    %86 = arith.mulf %73, %85 : vector<16x16xf32>
    %cst_22 = arith.constant dense<0.000000e+00> : vector<16xf32>
    %87 = vector.multi_reduction <add>, %86, %cst_22 [1] : vector<16x16xf32> to vector<16xf32>
    %88 = vector.shape_cast %87 : vector<16xf32> to vector<16x1xf32>
    %89 = vector.broadcast %8 : vector<1x1xf32> to vector<16x1xf32>
    %90 = arith.addf %88, %89 : vector<16x1xf32>
    %91 = vector.broadcast %6 : vector<1x16xf32> to vector<16x16xf32>
    %92 = arith.mulf %82, %91 : vector<16x16xf32>
    %cst_23 = arith.constant dense<0.000000e+00> : vector<16xf32>
    %93 = vector.multi_reduction <add>, %92, %cst_23 [1] : vector<16x16xf32> to vector<16xf32>
    %94 = vector.shape_cast %93 : vector<16xf32> to vector<16x1xf32>
    %95 = vector.broadcast %8 : vector<1x1xf32> to vector<16x1xf32>
    %96 = arith.addf %94, %95 : vector<16x1xf32>
    %97 = vector.broadcast %6 : vector<1x16xf32> to vector<16x16xf32>
    %98 = arith.mulf %84, %97 : vector<16x16xf32>
    %cst_24 = arith.constant dense<0.000000e+00> : vector<16xf32>
    %99 = vector.multi_reduction <add>, %98, %cst_24 [1] : vector<16x16xf32> to vector<16xf32>
    %100 = vector.shape_cast %99 : vector<16xf32> to vector<16x1xf32>
    %101 = vector.broadcast %8 : vector<1x1xf32> to vector<16x1xf32>
    %102 = arith.addf %100, %101 : vector<16x1xf32>
    %103 = arith.maximumf %90, %96 : vector<16x1xf32>
    %104 = arith.maximumf %103, %102 : vector<16x1xf32>
    %105 = arith.subf %90, %104 : vector<16x1xf32>
    %106 = math.exp %105 : vector<16x1xf32>
    %107 = arith.subf %96, %104 : vector<16x1xf32>
    %108 = math.exp %107 : vector<16x1xf32>
    %109 = arith.subf %102, %104 : vector<16x1xf32>
    %110 = math.exp %109 : vector<16x1xf32>
    %111 = arith.addf %106, %108 : vector<16x1xf32>
    %112 = arith.addf %111, %110 : vector<16x1xf32>
    %cst_25 = arith.constant 9.99999993E-9 : f32
    %113 = vector.broadcast %cst_25 : f32 to vector<16x1xf32>
    %114 = arith.addf %112, %113 : vector<16x1xf32>
    %115 = vector.broadcast %106 : vector<16x1xf32> to vector<16x32xf32>
    %116 = arith.mulf %115, %67 : vector<16x32xf32>
    %117 = vector.broadcast %108 : vector<16x1xf32> to vector<16x32xf32>
    %118 = arith.mulf %117, %79 : vector<16x32xf32>
    %119 = arith.addf %116, %118 : vector<16x32xf32>
    %120 = vector.broadcast %110 : vector<16x1xf32> to vector<16x32xf32>
    %121 = arith.mulf %120, %80 : vector<16x32xf32>
    %122 = arith.addf %119, %121 : vector<16x32xf32>
    %123 = vector.broadcast %114 : vector<16x1xf32> to vector<16x32xf32>
    %124 = arith.divf %122, %123 : vector<16x32xf32>
    %c0_26 = arith.constant 0 : index
    %c0_27 = arith.constant 0 : index
    %125 = vector.load %arg7[%c0_26, %c0_27] : memref<16x32xf32, #tpu.memory_space<vmem>>, vector<16x32xf32>
    tpu.vector_store %arg7[%c0_26, %c0_27], %124 {strides = array<i32>} : memref<16x32xf32, #tpu.memory_space<vmem>>, vector<16x32xf32>,
    return
  }
  func.func @transform_0(%arg0: i32) -> (i32, i32) {
    %c0_i32 = arith.constant 0 : i32
    %c0_i32_0 = arith.constant 0 : i32
    return %arg0, %c0_i32 : i32, i32
  }
  func.func @transform_1(%arg0: i32) -> (i32, i32) {
    %c0_i32 = arith.constant 0 : i32
    %c0_i32_0 = arith.constant 0 : i32
    return %arg0, %c0_i32 : i32, i32
  }
  func.func @transform_2(%arg0: i32) -> (i32, i32) {
    %c0_i32 = arith.constant 0 : i32
    %c0_i32_0 = arith.constant 0 : i32
    %c0_i32_1 = arith.constant 0 : i32
    return %c0_i32, %c0_i32_0 : i32, i32
  }
  func.func @transform_3(%arg0: i32) -> (i32, i32) {
    %c0_i32 = arith.constant 0 : i32
    %c0_i32_0 = arith.constant 0 : i32
    %c0_i32_1 = arith.constant 0 : i32
    return %c0_i32, %c0_i32_0 : i32, i32
  }
  func.func @transform_4(%arg0: i32) -> (i32, i32) {
    %c0_i32 = arith.constant 0 : i32
    %c0_i32_0 = arith.constant 0 : i32
    %c0_i32_1 = arith.constant 0 : i32
    return %c0_i32, %c0_i32_0 : i32, i32
  }
  func.func @transform_5(%arg0: i32) -> (i32, i32) {
    %c0_i32 = arith.constant 0 : i32
    %c0_i32_0 = arith.constant 0 : i32
    %c0_i32_1 = arith.constant 0 : i32
    return %c0_i32, %c0_i32_0 : i32, i32
  }
  func.func @transform_6(%arg0: i32) -> (i32, i32) {
    %c0_i32 = arith.constant 0 : i32
    %c0_i32_0 = arith.constant 0 : i32
    return %arg0, %c0_i32 : i32, i32
  }
}

</mosaic_0001>

<bundles_post_ra>
// kernel: tpu_custom_call.1
= control target key start
LH: loop header
LB: loop body
LE: loop exit
PB: predicated region body
PF: predicated region fallthrough
CT: control target
= control target key end

     0   :  { %11 = vsyncpa [#allocation3], 0  ;;  %s2431_s0 = inlined_call_operand.vmem [shape: f32[32,256], index: 0, kind: input, shape index: {}]   ;;  %s2432_s1 = inlined_call_operand.vmem [shape: f32[32,32], index: 1, kind: input, shape index: {}]   ;;  %s2433_s2 = inlined_call_operand.hbm [shape: f32[256,384], index: 2, kind: input, shape index: {}]   ;;  %s2434_s3 = inlined_call_operand.vmem [shape: f32[32,96], index: 3, kind: input, shape index: {}]   ;;  %s2435_s4 = inlined_call_operand.vmem [shape: f32[256,48], index: 4, kind: input, shape index: {}]   ;;  %s2436_s5 = inlined_call_operand.vmem [shape: f32[8,256], index: 5, kind: input, shape index: {}]   ;;  %s2437_s6 = inlined_call_operand.hbm [shape: f32[32,32], index: 6, kind: output, shape index: {}]  }
   0x1   :  { %12 = vsyncpa [#allocation4], 0 }
   0x2   :  { %14 = vsyncpa [#allocation4 + $0x1], 0  ;;  %s1983_s21 = smov 0   ;;  %s1985_s22 = smov 0  }
   0x3   :  { %s1987_s23 = smov 0   ;;  %s1989_s24 = smov 0  }
   0x4 LB: > { %s2004_s25 = sadd.s32 4294967295, %s1931_s24   ;;  %s1361_s26 = sadd.s32 4294967294, %s1931_s24   ;;  %s1931_s24 = sphi %s1989_s24, %s2461_s24   ;;  %s1927_s23 = sphi %s1987_s23, %s2460_s23   ;;  %s1923_s22 = sphi %s1985_s22, %s2459_s22   ;;  %s1919_s21 = sphi %s1983_s21, %s2458_s21  }
   0x5   : > { %s2008_s27 = sadd.s32 1, %s1931_s24   ;;  %s163_s28 = sadd.s32 1, %s1927_s23 }
   0x6   : > { %s160_s29 = ssub.s32 %s1931_s24, %s2008_s27  ;;  %p173_p0 = scmp.ne.s32.totalorder %s1927_s23, %s1923_s22 }
   0x7   : > { %p161_p1 = scmp.eq.s32.totalorder %s160_s29, 0  ;;  %p174_p2 = scmp.eq.s32.totalorder %s2004_s25, 1 }
   0x8   : > { %p179_p3 = scmp.ne.s32.totalorder %s1923_s22, %s1919_s21  ;;  %p180_p4 = scmp.eq.s32.totalorder %s1361_s26, 1 }
   0x9   : > { %s2019_s30 = scalar_select %p161_p1, %s1927_s23, %s163_s28  }
   0xa   : > { %p2021_p5 = por %p174_p2, %p173_p0  ;;  %p2025_p6 = por %p180_p4, %p179_p3 }
   0xb   : > { %p1362_p7 = scmp.ge.s32.totalorder %s1931_s24, 1  ;;  %p187_p8 = scmp.lt.s32.totalorder %s1931_s24, 3 }
   0xc   : > { %s2441_s7 = scalar_select %p2021_p5, 1, 0 }
   0xd   : > { %s2442_s8 = scalar_select %p2025_p6, 1, 0 }
   0xe   : > { %p2438_p9 = scmp.eq.s32.totalorder %s2004_s25, 0  ;;  %p2032_p10 = pnand %p1362_p7, %p187_p8 }
   0xf   : > { %s1933_s10 = smov [#allocation2]   ;;  %s1837_s15 = scalar_lea.hbm %s2433_s2, 12288 }
  0x10   : > { %s2443_s9 = scalar_select %p2032_p10, 1, 0 }
  0x11   : > { %s199_s11 = sshll.u32 %s1933_s10, 4  ;;  %p1742_p11 = pneg %p2032_p10  ;;  %s200_s11 = int_to_ptr.vmem [resolvable:$true] %s199_s11 }
  0x12   : > { %p1838_p13 = scmp.ne.s32.totalorder %s2433_s2, %s1837_s15  ;;  %p1844_p3 = scmp.lt.u32.totalorder %s1837_s15, %s2433_s2 }
  0x13   : > { %p2040_p12 = pnand %p2438_p9, %p1742_p11 }
  0x15   : > { %p1839_p0 = pneg %p2040_p12 }
  0x17   : > { %p1840_p1 = pnand %p1839_p0, %p1838_p13 }
  0x19   : > { %p1841_p2 = pneg %p1840_p1 }
  0x1b   : > { %p1846_p4 = pnand %p1844_p3, %p1841_p2 }
  0x1d   : > { %1849 = shalt.err (!%p1846_p4)
}
  0x1e   : > { %s1850_s20 = scalar_lea.vmem %s200_s11, 12288  ;;  %p1858_p9 = scmp.lt.s32.totalorder %s200_s11, %s200_s11 }
  0x1f   : > { %p1851_p7 = scmp.ne.s32.totalorder %s200_s11, %s1850_s20  ;;  %p1859_p6 = scmp.lt.s32.totalorder %s1850_s20, %s1850_s20 }
  0x21   : > { %p1853_p8 = pnand %p1851_p7, %p1839_p0  ;;  %p1860_p5 = por %p1859_p6, %p1858_p9 }
  0x23   : > { %p1854_p11 = pneg %p1853_p8 }
  0x25   : > { %p1861_p10 = pnand %p1860_p5, %p1854_p11 }
  0x27   : > { %1864 = shalt.err (!%p1861_p10)
}
  0x28   : > { %s1934_s26 = smov 384   ;;  %s1935_s28 = smov 24  }
  0x29   : > { %1745 = dma.hbm_to_vmem [thread:$0]  (!%p2040_p12), %s2433_s2, 12288, %s200_s11, [#allocation3], %s1934_s26, %s1934_s26, %s1935_s28  }
  0x2a   : > { %p2445_p13 = scmp.ne.s32.totalorder %s2443_s9, 0 }
  0x2b   : > { %p2446_p1 = scmp.eq.s32.totalorder (!%p2445_p13), %s2004_s25, 0 }
  0x2c   : > { %243 = sbr.rel (%p2445_p13) target bundleno = 1691 (0x69b), region = 44 }
  0x33   : > { %1910 = dma.done.wait (%p2446_p1), [#allocation3], 12288   ;;  %p2447_p0 = pmov %p2446_p1 }
  0x34   : > { %s1368_s13 = sshll.u32 %s2004_s25, 1  ;;  %v349_v0 = vld [vmem:[#allocation2 + $0x190] sm:$0xff]  ;;  %v352_v1 = vld [vmem:[#allocation2 + $0x1a8] sm:$0xff]  ;;  %v355_v5 = vld [vmem:[#allocation2 + $0x1c0] sm:$0xff]  ;;  %v547_v17 = vlaneseq  ;;  %s1941_s29 = smov 80  }
  0x35   : > { %1912 = vsyncadd (%p2447_p0), [#allocation3], 4294955008  ;;  %p280_p5 = scmp.lt.s32.totalorder %s1368_s13, 3  ;;  %v301_v2 = vld [vmem:[#allocation2 + $0x10] sm:$0xff]  ;;  %v1630_v3 = vpack.c.bf16 %v352_v1, %v349_v0  ;;  %v304_v4 = vld [vmem:[#allocation2 + $0x28] sm:$0xff]  ;;  %s1943_s12 = smov 48  }
  0x36   : > { %v358_v6 = vld [vmem:[#allocation2 + $0x1d8] sm:$0xff]  ;;  %v1632_v7 = vpack.c.bf16 %v304_v4, %v301_v2  ;;  %v307_v9 = vld [vmem:[#allocation2 + $0x40] sm:$0xff]  ;;  %v361_v11 = vld [vmem:[#allocation2 + $0x1f0] sm:$0xff]  ;;  %v2075_v24 = vand.u32 127, %v547_v17  ;;  %v2079_v35 = vshrl.u32 %v547_v17, 7  ;;  %s276_s15 = sand.u32 1, %s1923_s22  }
  0x37   : > { %s2463_s13 = smov (!%p280_p5, %s1368_s13), 3  ;;  %v1634_v8 = vpack.c.bf16 %v358_v6, %v355_v5  ;;  %v310_v10 = vld [vmem:[#allocation2 + $0x58] sm:$0xff]  ;;  %1631 = vmatprep.subr.bf16.mxu1 %v1630_v3  ;;  %v364_v12 = vld [vmem:[#allocation2 + $0x208] sm:$0xff]  ;;  %v313_v15 = vld [vmem:[#allocation2 + $0x70] sm:$0xff]  ;;  %v1936_v2 = vmov 1.0|1.0  }
  0x38   : > { %1633 = vmatpush3.bf16.msra.mxu1 %v1632_v7  ;;  %v1636_v13 = vpack.c.bf16 %v310_v10, %v307_v9  ;;  %s1418_s9 = sshll.u32 %s2463_s13, 4  ;;  %v1638_v14 = vpack.c.bf16 %v364_v12, %v361_v11  ;;  %v316_v16 = vld [vmem:[#allocation2 + $0x88] sm:$0xff]  ;;  %v367_v18 = vld [vmem:[#allocation2 + $0x220] sm:$0xff]  ;;  %v370_v19 = vld [vmem:[#allocation2 + $0x238] sm:$0xff]  ;;  %v609_v32 = vadd.s32 1, %v2075_v24  ;;  %v2082_v40 = vmul.u32 16, %v2075_v24 }
  0x39   : > { %1635 = vmatprep.subr.bf16.mxu1 %v1634_v8  ;;  %s2073_s14 = scalar_lea.vmem %s2431_s0, %s1418_s9  ;;  %v1640_v20 = vpack.c.bf16 %v316_v16, %v313_v15  ;;  %v1642_v21 = vpack.c.bf16 %v370_v19, %v367_v18  ;;  %v319_v22 = vld [vmem:[#allocation2 + $0xa0] sm:$0xff]  ;;  %v322_v23 = vld [vmem:[#allocation2 + $0xb8] sm:$0xff]  ;;  %v373_v25 = vld [vmem:[#allocation2 + $0x250] sm:$0xff]  ;;  %v575_v44 = vadd.s32 8, %v2079_v35  ;;  %v576_v51 = vadd.s32 16, %v2079_v35  ;;  %s1942_s9 = smov 96  }
  0x3a   : > { %v376_v26 = vld [vmem:[#allocation2 + $0x268] sm:$0xff]  ;;  %v1644_v28 = vpack.c.bf16 %v322_v23, %v319_v22  ;;  %v325_v30 = vld [vmem:[#allocation2 + $0xd0] sm:$0xff]  ;;  %v379_v33 = vld [vmem:[#allocation2 + $0x280] sm:$0xff]  ;;  %v2084_v41 = vmul.u32 16, %v609_v32  ;;  %vm593_vm0 = vcmp.ge.s32.totalorder %v2079_v35, %v2082_v40  ;;  %v577_v52 = vadd.s32 24, %v2079_v35  ;;  %s1367_s16 = sshll.u32 %s276_s15, 4 }
  0x3b   : > { %v296_v27 = vld [vmem:[%s2073_s14 + $0x8] sm:$0xff]  ;;  %v1646_v29 = vpack.c.bf16 %v376_v26, %v373_v25  ;;  %v382_v34 = vld [vmem:[#allocation2 + $0x298] sm:$0xff]  ;;  %v331_v38 = vld [vmem:[#allocation2 + $0x100] sm:$0xff]  ;;  %vm594_vm2 = vcmp.ge.s32.totalorder %v575_v44, %v2082_v40  ;;  %vm595_vm6 = vcmp.ge.s32.totalorder %v576_v51, %v2082_v40  ;;  %v578_v59 = vadd.s32 32, %v2079_v35  ;;  %s278_s18 = scalar_lea.vmem [#allocation5], %s1367_s16  ;;  %p2456_p9 = scmp.ne.s32.totalorder %s2441_s7, 0 }
  0x3c   : > { %1637 = vmatpush3.bf16.msra.mxu1 %v1636_v13  ;;  %536 = vmatprep.mubr.f32.mxu1 %v296_v27  ;;  %v328_v31 = vld [vmem:[#allocation2 + $0xe8] sm:$0xff]  ;;  %v1650_v37 = vpack.c.bf16 %v382_v34, %v379_v33  ;;  %v334_v39 = vld [vmem:[#allocation2 + $0x118] sm:$0xff]  ;;  %v385_v42 = vld [vmem:[#allocation2 + $0x2b0] sm:$0xff]  ;;  %vm611_vm1 = vcmp.lt.s32.totalorder %v2079_v35, %v2084_v41  ;;  %vm612_vm3 = vcmp.lt.s32.totalorder %v575_v44, %v2084_v41  ;;  %v579_v61 = vadd.s32 40, %v2079_v35  ;;  %s1275_s19 = sshll.u32 %s278_s18, 4  ;;  %s2387_s19 = int_to_ptr.vmem [resolvable:$true] %s1275_s19 }
  0x3d   : > { %1639 = vmatprep.subr.bf16.mxu1 %v1638_v14  ;;  %459 = vmatprep.mubr.f32.mxu0 %v296_v27  ;;  %v1648_v36 = vpack.c.bf16 %v328_v31, %v325_v30  ;;  %v388_v43 = vld [vmem:[#allocation2 + $0x2c8] sm:$0xff]  ;;  %v1652_v45 = vpack.c.bf16 %v334_v39, %v331_v38  ;;  %v337_v47 = vld [vmem:[#allocation2 + $0x130] sm:$0xff]  ;;  %v391_v49 = vld [vmem:[#allocation2 + $0x2e0] sm:$0xff]  ;;  %vm613_vm7 = vcmp.lt.s32.totalorder %v576_v51, %v2084_v41  ;;  %v580_v4 = vadd.s32 48, %v2079_v35 }
  0x3e   : > { %v1654_v46 = vpack.c.bf16 %v388_v43, %v385_v42  ;;  %v340_v48 = vld [vmem:[#allocation2 + $0x148] sm:$0xff]  ;;  %v394_v50 = vld [vmem:[#allocation2 + $0x2f8] sm:$0xff]  ;;  %vm2095_vm4 = vmand %vm593_vm0, %vm611_vm1  ;;  %vm596_vm8 = vcmp.ge.s32.totalorder %v577_v52, %v2082_v40  ;;  %vm614_vm9 = vcmp.lt.s32.totalorder %v577_v52, %v2084_v41  ;;  %vm597_vm13 = vcmp.ge.s32.totalorder %v578_v59, %v2082_v40 }
  0x3f   : > { %v1656_v53 = vpack.c.bf16 %v340_v48, %v337_v47  ;;  %v1658_v55 = vpack.c.bf16 %v394_v50, %v391_v49  ;;  %v343_v56 = vld [vmem:[#allocation2 + $0x160] sm:$0xff]  ;;  %v346_v57 = vld [vmem:[#allocation2 + $0x178] sm:$0xff]  ;;  %vm2099_vm5 = vmand %vm594_vm2, %vm612_vm3  ;;  %vm615_vm14 = vcmp.lt.s32.totalorder %v578_v59, %v2084_v41  ;;  %vm598_vm15 = vcmp.ge.s32.totalorder %v579_v61, %v2082_v40 }
  0x40   : > { %1641 = vmatpush3.bf16.msra.mxu1 %v1640_v20  ;;  %v1660_v60 = vpack.c.bf16 %v346_v57, %v343_v56  ;;  %vm1662_vm10 = vmpackc.low %vm2099_vm5, %vm2095_vm4  ;;  %v2124_v0 = vld [vmem:[%s2073_s14] sm:$0xff]  ;;  %vm616_vm0 = vcmp.lt.s32.totalorder %v579_v61, %v2084_v41  ;;  %v2129_v1 = vld [vmem:[%s2073_s14 + $0x18] sm:$0xff]  ;;  %v581_v5 = vadd.s32 56, %v2079_v35  ;;  %vm617_vm5 = vcmp.lt.s32.totalorder %v580_v4, %v2084_v41 }
  0x41   : > { %1643 = vmatprep.subr.bf16.mxu1 %v1642_v21  ;;  %vm2113_vm11 = vmand %vm595_vm6, %vm613_vm7  ;;  %v2144_v3 = vld [vmem:[%s2073_s14 + $0x10] sm:$0xff]  ;;  %vm599_vm7 = vcmp.ge.s32.totalorder %v580_v4, %v2082_v40  ;;  %v582_v6 = vadd.s32 64, %v2079_v35  ;;  %v583_v7 = vadd.s32 72, %v2079_v35  ;;  %v584_v8 = vadd.s32 80, %v2079_v35  ;;  %v2200_v14 = vld [vmem:[%s2436_s5] sm:$0xff]  ;;  %s1372_s14 = sshll.u32 %s2463_s13, 3 }
  0x42   : > { %vm2117_vm12 = vmand %vm596_vm8, %vm614_vm9  ;;  %vm600_vm4 = vcmp.ge.s32.totalorder %v581_v5, %v2082_v40  ;;  %vm618_vm8 = vcmp.lt.s32.totalorder %v581_v5, %v2084_v41  ;;  %v585_v9 = vadd.s32 88, %v2079_v35  ;;  %v586_v10 = vadd.s32 96, %v2079_v35  ;;  %v300_v33 = vld [vmem:[#allocation2 + $0x8] sm:$0xff]  ;;  %v303_v34 = vld [vmem:[#allocation2 + $0x20] sm:$0xff]  ;;  %s290_s11 = scalar_lea.vmem %s2432_s1, %s1372_s14  ;;  %s1939_s14 = smov 32  }
  0x43   : > { %vm1666_vm1 = vmpackc.low %vm2117_vm12, %vm2113_vm11  ;;  %vm601_vm12 = vcmp.ge.s32.totalorder %v582_v6, %v2082_v40  ;;  %v587_v11 = vadd.s32 104, %v2079_v35  ;;  %v588_v12 = vadd.s32 112, %v2079_v35  ;;  %v589_v13 = vadd.s32 120, %v2079_v35  ;;  %v302_v38 = vld [vmem:[#allocation2 + $0x18] sm:$0xff]  ;;  %v305_v43 = vld [vmem:[#allocation2 + $0x30] sm:$0xff]  ;;  %s1940_s13 = smov 64  }
  0x44   : > { %1645 = vmatpush3.bf16.msra.mxu1 %v1644_v28  ;;  %vm631_vm2 = vmand %vm597_vm13, %vm615_vm14  ;;  %vm602_vm13 = vcmp.ge.s32.totalorder %v583_v7, %v2082_v40  ;;  %vm619_vm14 = vcmp.lt.s32.totalorder %v582_v6, %v2084_v41  ;;  %v676_v15 = vrot.slane %v2200_v14, 6  ;;  %v561_v16 = vsub.s32 1, %v2079_v35  ;;  %v306_v39 = vld [vmem:[#allocation2 + $0x38] sm:$0xff]  ;;  %v308_v44 = vld [vmem:[#allocation2 + $0x48] sm:$0xff] }
  0x45   : > { %1647 = vmatprep.subr.bf16.mxu1 %v1646_v29  ;;  %vm632_vm3 = vmand %vm598_vm15, %vm616_vm0  ;;  %vm620_vm15 = vcmp.lt.s32.totalorder %v583_v7, %v2084_v41  ;;  %v569_v27 = vsub.s32 2, %v2079_v35  ;;  %v1572_v47 = vpack.c.bf16 %v308_v44, %v305_v43  ;;  %v311_v49 = vld [vmem:[#allocation2 + $0x60] sm:$0xff]  ;;  %v314_v50 = vld [vmem:[#allocation2 + $0x78] sm:$0xff] }
  0x46   : > { %vm1670_vm6 = vmpackc.low %vm632_vm3, %vm631_vm2  ;;  %vm603_vm3 = vcmp.ge.s32.totalorder %v584_v8, %v2082_v40  ;;  %1734 = vpush %v676_v15  ;;  %v562_v18 = vrot.slane %v2200_v14, %v561_v16  ;;  %v318_v51 = vld [vmem:[#allocation2 + $0x98] sm:$0xff]  ;;  %v321_v52 = vld [vmem:[#allocation2 + $0xb0] sm:$0xff] }
  0x47   : > { %vm633_vm9 = vmand %vm599_vm7, %vm617_vm5  ;;  %vm621_vm7 = vcmp.lt.s32.totalorder %v584_v8, %v2084_v41  ;;  %v570_v28 = vrot.slane %v2200_v14, %v569_v27  ;;  %v1578_v54 = vpack.c.bf16 %v321_v52, %v318_v51  ;;  %v320_v56 = vld [vmem:[#allocation2 + $0xa8] sm:$0xff]  ;;  %v327_v58 = vld [vmem:[#allocation2 + $0xe0] sm:$0xff] }
  0x48   : > { %1649 = vmatpush3.bf16.msra.mxu1 %v1648_v36  ;;  %vm635_vm0 = vmand %vm601_vm12, %vm619_vm14  ;;  %vm623_vm12 = vcmp.lt.s32.totalorder %v586_v10, %v2084_v41  ;;  %v299_v36 = vld [vmem:[#allocation2] sm:$0xff]  ;;  %v324_v57 = vld [vmem:[#allocation2 + $0xc8] sm:$0xff] }
  0x49   : > { %1651 = vmatprep.subr.bf16.mxu1 %v1650_v37  ;;  %vm637_vm5 = vmand %vm603_vm3, %vm621_vm7  ;;  %vm626_vm3 = vcmp.lt.s32.totalorder %v589_v13, %v2084_v41  ;;  %v1566_v37 = vpack.c.bf16 %v303_v34, %v300_v33  ;;  %v323_v61 = vld [vmem:[#allocation2 + $0xc0] sm:$0xff]  ;;  %v326_v62 = vld [vmem:[#allocation2 + $0xd8] sm:$0xff] }
  0x4a   : > { %v330_v63 = vld [vmem:[#allocation2 + $0xf8] sm:$0xff]  ;;  %v1584_v4 = vpack.c.bf16 %v326_v62, %v323_v61  ;;  %v329_v6 = vld [vmem:[#allocation2 + $0xf0] sm:$0xff]  ;;  %v332_v7 = vld [vmem:[#allocation2 + $0x108] sm:$0xff] }
  0x4b   : > { %1567 = vmatprep.subr.bf16.mxu0 %v1566_v37  ;;  %v336_v8 = vld [vmem:[#allocation2 + $0x128] sm:$0xff]  ;;  %v342_v15 = vld [vmem:[#allocation2 + $0x158] sm:$0xff]  ;;  %v345_v16 = vld [vmem:[#allocation2 + $0x170] sm:$0xff] }
  0x4c   : > { %1653 = vmatpush3.bf16.msra.mxu1 %v1652_v45  ;;  %v312_v45 = vld [vmem:[#allocation2 + $0x68] sm:$0xff]  ;;  %v350_v27 = vld [vmem:[#allocation2 + $0x198] sm:$0xff]  ;;  %v371_v51 = vld [vmem:[#allocation2 + $0x240] sm:$0xff] }
  0x4d   : > { %1655 = vmatprep.subr.bf16.mxu1 %v1654_v46  ;;  %v315_v46 = vld [vmem:[#allocation2 + $0x80] sm:$0xff]  ;;  %v356_v33 = vld [vmem:[#allocation2 + $0x1c8] sm:$0xff]  ;;  %v374_v52 = vld [vmem:[#allocation2 + $0x258] sm:$0xff] }
  0x4e   : > { %v1574_v48 = vpack.c.bf16 %v315_v46, %v312_v45  ;;  %v360_v34 = vld [vmem:[#allocation2 + $0x1e8] sm:$0xff]  ;;  %v365_v45 = vld [vmem:[#allocation2 + $0x210] sm:$0xff]  ;;  %v378_v61 = vld [vmem:[#allocation2 + $0x278] sm:$0xff] }
  0x4f   : > { %v368_v46 = vld [vmem:[#allocation2 + $0x228] sm:$0xff]  ;;  %v381_v62 = vld [vmem:[#allocation2 + $0x290] sm:$0xff] }
  0x50   : > { %1657 = vmatpush3.bf16.msra.mxu1 %v1656_v53  ;;  %v1576_v53 = vpack.c.bf16 %v314_v50, %v311_v49  ;;  %v1612_v49 = vpack.c.bf16 %v368_v46, %v365_v45  ;;  %v902_v45 = vld [vmem:[%s2435_s4 + $0xa8] sm:$0xff] }
  0x51   : > { %1659 = vmatprep.subr.bf16.mxu1 %v1658_v55  ;;  %v317_v55 = vld [vmem:[#allocation2 + $0x90] sm:$0xff] }
  0x52   : > { %v1580_v59 = vpack.c.bf16 %v320_v56, %v317_v55 }
  0x54   : > { %1661 = vmatpush3.bf16.msra.mxu1 %v1660_v60  ;;  %v1582_v60 = vpack.c.bf16 %v327_v58, %v324_v57 }
  0x55   : > { %1663 = vmatprep.subr.msk.bf16.mxu1 %vm1662_vm10, %v1936_v2 }
  0x57   : > { %537 = vmatmul.mubr.f32.vlgmr.msra.gmra.mrb[0].mxu1 %v2124_v0 }
  0x58   : > { %541 = vmatprep.mubr.f32.mxu1 %v2129_v1  ;;  %1665 = vmatpush3.bf16.msk.msra.mxu1 %vm1662_vm10, %v1936_v2  ;;  %vm634_vm10 = vmand %vm600_vm4, %vm618_vm8  ;;  %vm622_vm4 = vcmp.lt.s32.totalorder %v585_v9, %v2084_v41 }
  0x59   : > { %1667 = vmatprep.subr.msk.bf16.mxu1 %vm1666_vm1, %v1936_v2  ;;  %vm1674_vm11 = vmpackc.low %vm634_vm10, %vm633_vm9  ;;  %vm605_vm10 = vcmp.ge.s32.totalorder %v586_v10, %v2082_v40  ;;  %v1588_v10 = vpack.c.bf16 %v332_v7, %v329_v6  ;;  %v384_v6 = vld [vmem:[#allocation2 + $0x2a8] sm:$0xff]  ;;  %v387_v7 = vld [vmem:[#allocation2 + $0x2c0] sm:$0xff] }
  0x5a   : > { %vm639_vm14 = vmand %vm605_vm10, %vm623_vm12 }
  0x5b   : > { %542 = vmatmul.mubr.f32.gmra.mrb[2].mxu1 %v2144_v3 }
  0x5c   : > { %1669 = vmatpush3.bf16.msk.msra.mxu1 %vm1666_vm1, %v1936_v2  ;;  %vm636_vm1 = vmand %vm602_vm13, %vm620_vm15  ;;  %vm624_vm13 = vcmp.lt.s32.totalorder %v587_v11, %v2084_v41  ;;  %vm607_vm15 = vcmp.ge.s32.totalorder %v588_v12, %v2082_v40 }
  0x5d   : > { %1671 = vmatprep.subr.msk.bf16.mxu1 %vm1670_vm6, %v1936_v2  ;;  %vm1678_vm2 = vmpackc.low %vm636_vm1, %vm635_vm0  ;;  %vm625_vm0 = vcmp.lt.s32.totalorder %v588_v12, %v2084_v41  ;;  %v1568_v41 = vpack.c.bf16 %v302_v38, %v299_v36  ;;  %v335_v12 = vld [vmem:[#allocation2 + $0x120] sm:$0xff] }
  0x5e   : > { %vm641_vm7 = vmand %vm607_vm15, %vm625_vm0  ;;  %v363_v36 = vld [vmem:[#allocation2 + $0x200] sm:$0xff]  ;;  %vm1012_vm15 = vcmask 261120   ;;  %vm1114_vm0 = vcmask 130048  }
  0x5f   : > { %1569 = vmatpush1.bf16.msra.mxu0 %v1568_v41  ;;  %v1606_v38 = vpack.c.bf16 %v363_v36, %v360_v34  ;;  %v366_v41 = vld [vmem:[#allocation2 + $0x218] sm:$0xff]  ;;  %v881_v34 = vld [vmem:[%s2435_s4] sm:$0xff] }
  0x60   : > { %1673 = vmatpush3.bf16.msk.msra.mxu1 %vm1670_vm6, %v1936_v2  ;;  %vm604_vm6 = vcmp.ge.s32.totalorder %v585_v9, %v2082_v40  ;;  %v339_v9 = vld [vmem:[#allocation2 + $0x140] sm:$0xff] }
  0x61   : > { %1675 = vmatprep.subr.msk.bf16.mxu1 %vm1674_vm11, %v1936_v2  ;;  %vm638_vm8 = vmand %vm604_vm6, %vm622_vm4 }
  0x62   : > { %vm1682_vm9 = vmpackc.low %vm638_vm8, %vm637_vm5  ;;  %vm755_vm8 = vcmask 64512  }
  0x64   : > { %1677 = vmatpush3.bf16.msk.msra.mxu1 %vm1674_vm11, %v1936_v2  ;;  %vm606_vm11 = vcmp.ge.s32.totalorder %v587_v11, %v2082_v40  ;;  %v1590_v11 = vpack.c.bf16 %v339_v9, %v336_v8  ;;  %v1622_v8 = vpack.c.bf16 %v387_v7, %v384_v6  ;;  %v383_v9 = vld [vmem:[#allocation2 + $0x2a0] sm:$0xff]  ;;  %v890_v7 = vld [vmem:[%s2435_s4 + $0x48] sm:$0xff] }
  0x65   : > { %1679 = vmatprep.subr.msk.bf16.mxu1 %vm1678_vm2, %v1936_v2  ;;  %vm640_vm1 = vmand %vm606_vm11, %vm624_vm13  ;;  %v889_v6 = vld [vmem:[%s2435_s4 + $0x40] sm:$0xff] }
  0x66   : > { %vm1686_vm6 = vmpackc.low %vm640_vm1, %vm639_vm14 }
  0x68   : > { %1681 = vmatpush3.bf16.msk.msra.mxu1 %vm1678_vm2, %v1936_v2  ;;  %vm608_vm2 = vcmp.ge.s32.totalorder %v589_v13, %v2082_v40  ;;  %v309_v40 = vld [vmem:[#allocation2 + $0x50] sm:$0xff]  ;;  %v338_v13 = vld [vmem:[#allocation2 + $0x138] sm:$0xff] }
  0x69   : > { %1683 = vmatprep.subr.msk.bf16.mxu1 %vm1682_vm9, %v1936_v2  ;;  %vm642_vm4 = vmand %vm608_vm2, %vm626_vm3  ;;  %v1570_v42 = vpack.c.bf16 %v309_v40, %v306_v39  ;;  %v359_v39 = vld [vmem:[#allocation2 + $0x1e0] sm:$0xff]  ;;  %v362_v40 = vld [vmem:[#allocation2 + $0x1f8] sm:$0xff] }
  0x6a   : > { %vm1690_vm5 = vmpackc.low %vm642_vm4, %vm641_vm7  ;;  %v1608_v43 = vpack.c.bf16 %v362_v40, %v359_v39  ;;  %v900_v39 = vld [vmem:[%s2435_s4 + $0x98] sm:$0xff] }
  0x6b   : > { %1571 = vmatprep.subr.bf16.mxu0 %v1570_v42  ;;  %v369_v42 = vld [vmem:[#allocation2 + $0x230] sm:$0xff] }
  0x6c   : > { %1685 = vmatpush3.bf16.msk.msra.mxu1 %vm1682_vm9, %v1936_v2  ;;  %1573 = vmatpush1.bf16.msra.mxu0 %v1572_v47  ;;  %v1610_v44 = vpack.c.bf16 %v369_v42, %v366_v41  ;;  %v372_v47 = vld [vmem:[#allocation2 + $0x248] sm:$0xff]  ;;  %v883_v42 = vld [vmem:[%s2435_s4 + $0x10] sm:$0xff] }
  0x6d   : > { %1687 = vmatprep.subr.msk.bf16.mxu1 %vm1686_vm6, %v1936_v2  ;;  %1575 = vmatprep.subr.bf16.mxu0 %v1574_v48  ;;  %v375_v48 = vld [vmem:[#allocation2 + $0x260] sm:$0xff] }
  0x6e   : > { %v1614_v50 = vpack.c.bf16 %v375_v48, %v372_v47  ;;  %v885_v48 = vld [vmem:[%s2435_s4 + $0x20] sm:$0xff] }
  0x70   : > { %1689 = vmatpush3.bf16.msk.msra.mxu1 %vm1686_vm6, %v1936_v2  ;;  %1577 = vmatpush1.bf16.msra.mxu0 %v1576_v53  ;;  %v1616_v53 = vpack.c.bf16 %v374_v52, %v371_v51  ;;  %v904_v51 = vld [vmem:[%s2435_s4 + $0xb8] sm:$0xff]  ;;  %v1004_v52 = vld [vmem:[%s2434_s3] sm:$0xff] }
  0x71   : > { %1691 = vmatprep.subr.msk.bf16.mxu1 %vm1690_vm5, %v1936_v2  ;;  %1579 = vmatprep.subr.bf16.mxu0 %v1578_v54 }
  0x74   : > { %1693 = vmatpush3.bf16.msk.msra.mxu1 %vm1690_vm5, %v1936_v2  ;;  %v333_v2 = vld [vmem:[#allocation2 + $0x110] sm:$0xff]  ;;  %1581 = vmatpush1.bf16.msra.mxu0 %v1580_v59 }
  0x75   : > { %1583 = vmatprep.subr.bf16.mxu0 %v1582_v60  ;;  %v1586_v5 = vpack.c.bf16 %v333_v2, %v330_v63  ;;  %v1618_v63 = vpack.c.bf16 %v381_v62, %v378_v61  ;;  %v377_v2 = vld [vmem:[#allocation2 + $0x270] sm:$0xff]  ;;  %v905_v61 = vld [vmem:[%s2435_s4 + $0xc0] sm:$0xff]  ;;  %v906_v62 = vld [vmem:[%s2435_s4 + $0xc8] sm:$0xff] }
  0x77   : > { %s1735_s17 = spop %1734 }
  0x78   : > { %1585 = vmatpush1.bf16.msra.mxu0 %v1584_v4  ;;  %v678_v54 = vstv %s1735_s17  ;;  %v380_v4 = vld [vmem:[#allocation2 + $0x288] sm:$0xff]  ;;  %s1419_s17 = sshll.u32 %s2004_s25, 8  ;;  %s2390_s25 = scalar_lea.sflag [#allocation4], %s276_s15 }
  0x79   : > { %1587 = vmatprep.subr.bf16.mxu0 %v1586_v5  ;;  %v1620_v5 = vpack.c.bf16 %v380_v4, %v377_v2  ;;  %v1002_v2 = vld [vmem:[%s290_s11] sm:$0xff]  ;;  %s2385_s28 = scalar_lea.hbm %s2437_s6, %s1419_s17 }
  0x7c   : > { %1589 = vmatpush1.bf16.msra.mxu0 %v1588_v10  ;;  %v386_v10 = vld [vmem:[#allocation2 + $0x2b8] sm:$0xff] }
  0x7d   : > { %1591 = vmatprep.subr.bf16.mxu0 %v1590_v11  ;;  %v1624_v11 = vpack.c.bf16 %v386_v10, %v383_v9  ;;  %v908_v9 = vld [vmem:[%s2435_s4 + $0xd8] sm:$0xff]  ;;  %v1003_v10 = vld [vmem:[%s290_s11 + $0x8] sm:$0xff] }
 0x12a   : > { %v1452_v17 = vpop.f32.mrb[0].mxu1 }
 0x12b   : > { %v1453_v19 = vpop.f32.mrb[1].mxu1 }
 0x12c   : > { %v1454_v20 = vadd.f32 %v1453_v19, %v1452_v17  ;;  %v1592_v17 = vpack.c.bf16 %v338_v13, %v335_v12  ;;  %v341_v19 = vld [vmem:[#allocation2 + $0x150] sm:$0xff]  ;;  %v390_v12 = vld [vmem:[#allocation2 + $0x2d8] sm:$0xff] }
 0x12d   : > { %v393_v13 = vld [vmem:[#allocation2 + $0x2f0] sm:$0xff] }
 0x12e   : > { %v563_v21 = vadd.f32 %v1454_v20, %v562_v18  ;;  %v1455_v22 = vpop.f32.mrb[2].mxu1  ;;  %v344_v20 = vld [vmem:[#allocation2 + $0x168] sm:$0xff]  ;;  %1593 = vmatpush1.bf16.msra.mxu0 %v1592_v17 }
 0x12f   : > { %v1456_v23 = vpop.f32.mrb[3].mxu1  ;;  %v392_v17 = vld [vmem:[#allocation2 + $0x2e8] sm:$0xff] }
 0x130   : > { %1801 = vtanh.f32 %v563_v21  ;;  %v1457_v25 = vadd.f32 %v1456_v23, %v1455_v22  ;;  %v348_v21 = vld [vmem:[#allocation2 + $0x188] sm:$0xff]  ;;  %v351_v22 = vld [vmem:[#allocation2 + $0x1a0] sm:$0xff]  ;;  %v1596_v23 = vpack.c.bf16 %v344_v20, %v341_v19  ;;  %v784_v19 = vadd.s32 1, %v2079_v35 }
 0x131   : > { %v780_v20 = vadd.s32 128, %v2075_v24 }
 0x132   : > { %v564_v26 = vadd.f32 %v1457_v25, %v562_v18  ;;  %v1594_v18 = vpack.c.bf16 %v345_v16, %v342_v15  ;;  %v1598_v25 = vpack.c.bf16 %v351_v22, %v348_v21  ;;  %v1626_v15 = vpack.c.bf16 %v393_v13, %v390_v12  ;;  %v389_v16 = vld [vmem:[#allocation2 + $0x2d0] sm:$0xff] }
 0x133   : > { %v781_v21 = vmul.u32 32, %v2079_v35  ;;  %v785_v22 = vmul.u32 32, %v784_v19  ;;  %v891_v13 = vld [vmem:[%s2435_s4 + $0x50] sm:$0xff] }
 0x134   : > { %1803 = vtanh.f32 %v564_v26  ;;  %1595 = vmatprep.subr.bf16.mxu0 %v1594_v18  ;;  %v347_v26 = vld [vmem:[#allocation2 + $0x180] sm:$0xff]  ;;  %v1628_v18 = vpack.c.bf16 %v392_v17, %v389_v16  ;;  %v910_v17 = vld [vmem:[%s2435_s4 + $0xe8] sm:$0xff] }
 0x135   : > { %1597 = vmatpush1.bf16.msra.mxu0 %v1596_v23  ;;  %v1937_v23 = vmov 0.0   ;;  %vm783_vm9 = vcmp.ge.s32.totalorder %v780_v20, %v781_v21  ;;  %vm782_vm10 = vcmp.ge.s32.totalorder %v2075_v24, %v781_v21  ;;  %vm787_vm11 = vcmp.lt.s32.totalorder %v780_v20, %v785_v22  ;;  %v909_v16 = vld [vmem:[%s2435_s4 + $0xe0] sm:$0xff]  ;;  %v894_v21 = vld [vmem:[%s2435_s4 + $0x68] sm:$0xff] }
 0x136   : > { %1599 = vmatprep.subr.bf16.mxu0 %v1598_v25  ;;  %vm786_vm12 = vcmp.lt.s32.totalorder %v2075_v24, %v785_v22  ;;  %vm789_vm13 = vmand %vm783_vm9, %vm787_vm11  ;;  %v1938_v25 = vmov 1.0   ;;  %v1718_v19 = vpack.c.bf16 %v910_v17, %v909_v16  ;;  %v893_v20 = vld [vmem:[%s2435_s4 + $0x60] sm:$0xff] }
 0x137   : > { %1407 = vmatprep.subr.msk.mxu1 %vm789_vm13, %v1938_v25  ;;  %vm788_vm14 = vmand %vm782_vm10, %vm786_vm12  ;;  %v1720_v22 = vpack.c.bf16 %v894_v21, %v893_v20 }
 0x13a   : > { %v1802_v29 = vpop.eup %1801 }
 0x13b   : > { %v571_v30 = vmul.f32 %v1802_v29, %v570_v28  ;;  %v357_v29 = vld [vmem:[#allocation2 + $0x1d0] sm:$0xff] }
 0x13d   : > { %1552 = vmatprep.mubr.f32.mxu1 %v571_v30  ;;  %v1600_v30 = vpack.c.bf16 %v350_v27, %v347_v26 }
 0x13e   : > { %v1804_v31 = vpop.eup %1803 }
 0x13f   : > { %v572_v32 = vmul.f32 %v1804_v31, %v570_v28  ;;  %v354_v28 = vld [vmem:[#allocation2 + $0x1b8] sm:$0xff]  ;;  %1601 = vmatpush1.bf16.msra.mxu0 %v1600_v30 }
 0x140   : > { %v1602_v31 = vpack.c.bf16 %v357_v29, %v354_v28 }
 0x141   : > { %1553 = vmatmul.mubr.f32.vlgmr.msra.gmra.mrb[4].mxu1 %v572_v32  ;;  %v353_v32 = vld [vmem:[#allocation2 + $0x1b0] sm:$0xff] }
 0x142   : > { %v1604_v37 = vpack.c.bf16 %v356_v33, %v353_v32  ;;  %1603 = vmatprep.subr.bf16.mxu0 %v1602_v31  ;;  %864 = vmatprep.mubr.f32.mxu1 %v1937_v23  ;;  %v897_v32 = vld [vmem:[%s2435_s4 + $0x80] sm:$0xff]  ;;  %v898_v33 = vld [vmem:[%s2435_s4 + $0x88] sm:$0xff] }
 0x143   : > { %1408 = vmatpush1.msk.msra.mxu1 %vm788_vm14, %v1938_v25  ;;  %v1694_v36 = vpack.c.bf16 %v898_v33, %v897_v32 }
 0x144   : > { %1605 = vmatpush1.bf16.msra.mxu0 %v1604_v37  ;;  %v882_v37 = vld [vmem:[%s2435_s4 + $0x8] sm:$0xff] }
 0x145   : > { %1607 = vmatprep.subr.bf16.mxu0 %v1606_v38  ;;  %v899_v38 = vld [vmem:[%s2435_s4 + $0x90] sm:$0xff]  ;;  %v1696_v40 = vpack.c.bf16 %v882_v37, %v881_v34  ;;  %v549_v34 = vsub.s32 0, %v2079_v35 }
 0x146   : > { %v1698_v41 = vpack.c.bf16 %v900_v39, %v899_v38 }
 0x147   : > { %v550_v37 = vrot.slane %v2200_v14, %v549_v34 }
 0x148   : > { %1609 = vmatpush1.bf16.msra.mxu0 %v1608_v43  ;;  %v884_v43 = vld [vmem:[%s2435_s4 + $0x18] sm:$0xff] }
 0x149   : > { %1611 = vmatprep.subr.bf16.mxu0 %v1610_v44  ;;  %v901_v44 = vld [vmem:[%s2435_s4 + $0xa0] sm:$0xff]  ;;  %v1700_v46 = vpack.c.bf16 %v884_v43, %v883_v42 }
 0x14a   : > { %v1702_v47 = vpack.c.bf16 %v902_v45, %v901_v44 }
 0x14c   : > { %1613 = vmatpush1.bf16.msra.mxu0 %v1612_v49  ;;  %v886_v49 = vld [vmem:[%s2435_s4 + $0x28] sm:$0xff] }
 0x14d   : > { %1615 = vmatprep.subr.bf16.mxu0 %v1614_v50  ;;  %v903_v50 = vld [vmem:[%s2435_s4 + $0xb0] sm:$0xff] }
 0x150   : > { %1617 = vmatpush1.bf16.msra.mxu0 %v1616_v53  ;;  %v1005_v53 = vld [vmem:[%s2434_s3 + $0x8] sm:$0xff] }
 0x151   : > { %1619 = vmatprep.subr.bf16.mxu0 %v1618_v63 }
 0x154   : > { %1621 = vmatpush1.bf16.msra.mxu0 %v1620_v5  ;;  %v1710_v5 = vpack.c.bf16 %v906_v62, %v905_v61 }
 0x155   : > { %1623 = vmatprep.subr.bf16.mxu0 %v1622_v8  ;;  %v907_v8 = vld [vmem:[%s2435_s4 + $0xd0] sm:$0xff] }
 0x156   : > { %v1714_v12 = vpack.c.bf16 %v908_v9, %v907_v8 }
 0x158   : > { %1625 = vmatpush1.bf16.msra.mxu0 %v1624_v11  ;;  %v1712_v11 = vpack.c.bf16 %v890_v7, %v889_v6 }
 0x159   : > { %1627 = vmatprep.subr.bf16.mxu0 %v1626_v15  ;;  %v892_v15 = vld [vmem:[%s2435_s4 + $0x58] sm:$0xff] }
 0x15c   : > { %1629 = vmatpush1.bf16.msra.mxu0 %v1628_v18  ;;  %v1716_v18 = vpack.c.bf16 %v892_v15, %v891_v13 }
 0x15d   : > { %1695 = vmatprep.subr.bf16.mxu0 %v1694_v36  ;;  %v294_v36 = vld [vmem:[%s2436_s5 + $0x8] sm:$0xff] }
 0x15e   : > { %v554_v38 = vrot.slane %v294_v36, %v549_v34 }
 0x15f   : > { %460 = vmatmul.mubr.f32.vlgmr.msra.gmra.mrb[0].mxu0 %v2124_v0 }
 0x160   : > { %465 = vmatprep.mubr.f32.mxu0 %v2129_v1  ;;  %1697 = vmatpush3.bf16.msra.mxu0 %v1696_v40 }
 0x161   : > { %1699 = vmatprep.subr.bf16.mxu0 %v1698_v41 }
 0x163   : > { %466 = vmatmul.mubr.f32.gmra.mrb[2].mxu0 %v2144_v3 }
 0x164   : > { %1701 = vmatpush3.bf16.msra.mxu0 %v1700_v46 }
 0x165   : > { %1703 = vmatprep.subr.bf16.mxu0 %v1702_v47 }
 0x214   : > { %v1554_v55 = vpop.f32.mrb[4].mxu1 }
 0x215   : > { %v746_v56 = vpop.f32.mrb[5].mxu1  ;;  %v752_v58 = vadd.f32 %v1554_v55, %v678_v54  ;;  %v1726_v55 = vpack.c.bf16 %v1005_v53, %v1004_v52  ;;  %v1010_v53 = vsub.s32 3, %v2079_v35 }
 0x216   : > { %v747_v57 = vadd.f32 %v746_v56, %v678_v54  ;;  %v1704_v54 = vpack.c.bf16 %v886_v49, %v885_v48  ;;  %v1006_v56 = vld [vmem:[%s2434_s3 + $0x10] sm:$0xff] }
 0x217   : > { %v759_v60 = vsel %vm755_vm8, %v752_v58, -inf  ;;  %1727 = vmatprep.subr.bf16.mxu1 %v1726_v55 }
 0x218   : > { %v756_v59 = vsel %vm755_vm8, %v747_v57, -inf  ;;  %1705 = vmatpush3.bf16.msra.mxu0 %v1704_v54  ;;  %v1011_v54 = vrot.slane %v2200_v14, %v1010_v53 }
 0x219   : > { %757 = vmax.xlane.f32.xlu0 %v756_v59  ;;  %v888_v59 = vld [vmem:[%s2435_s4 + $0x38] sm:$0xff] }
 0x21d   : > { %760 = vmax.xlane.f32.xlu0 %v759_v60  ;;  %v1007_v60 = vld [vmem:[%s2434_s3 + $0x18] sm:$0xff] }
 0x21e   : > { %v1730_v63 = vpack.c.bf16 %v1007_v60, %v1006_v56 }
 0x2a6   : > { %v758_v26 = vpop.xlane.xlu0 %757 }
 0x2a7   : > { %v762_v27 = vsub.f32 %v747_v57, %v758_v26  ;;  %v1706_v57 = vpack.c.bf16 %v904_v51, %v903_v50  ;;  %v911_v26 = vld [vmem:[%s2435_s4 + $0xf0] sm:$0xff] }
 0x2a9   : > { %v764_v28 = vmul.f32 1.442695, %v762_v27  ;;  %1707 = vmatprep.subr.bf16.mxu0 %v1706_v57  ;;  %v912_v27 = vld [vmem:[%s2435_s4 + $0xf8] sm:$0xff] }
 0x2aa   : > { %v761_v29 = vpop.xlane.xlu0 %760 }
 0x2ab   : > { %1805 = vpow2.f32 %v764_v28  ;;  %v763_v30 = vsub.f32 %v752_v58, %v761_v29  ;;  %v887_v58 = vld [vmem:[%s2435_s4 + $0x30] sm:$0xff]  ;;  %v1722_v28 = vpack.c.bf16 %v912_v27, %v911_v26 }
 0x2ac   : > { %v1708_v4 = vpack.c.bf16 %v888_v59, %v887_v58  ;;  %v895_v29 = vld [vmem:[%s2435_s4 + $0x70] sm:$0xff] }
 0x2ad   : > { %v766_v31 = vmul.f32 1.442695, %v763_v30  ;;  %v896_v30 = vld [vmem:[%s2435_s4 + $0x78] sm:$0xff] }
 0x2ae   : > { %1709 = vmatpush3.bf16.msra.mxu0 %v1708_v4 }
 0x2af   : > { %1807 = vpow2.f32 %v766_v31  ;;  %1711 = vmatprep.subr.bf16.mxu0 %v1710_v5  ;;  %v1724_v31 = vpack.c.bf16 %v896_v30, %v895_v29 }
 0x2b2   : > { %1713 = vmatpush3.bf16.msra.mxu0 %v1712_v11 }
 0x2b3   : > { %1715 = vmatprep.subr.bf16.mxu0 %v1714_v12 }
 0x2b5   : > { %v1806_v24 = vpop.eup %1805 }
 0x2b6   : > { %1409 = vmatmul.mubr.msk.f32.vlgmr.msra.gmra.mrb[6].mxu1 %vm755_vm8, %v1806_v24  ;;  %v768_v3 = vsel %vm755_vm8, %v1806_v24, 0.0  ;;  %1717 = vmatpush3.bf16.msra.mxu0 %v1716_v18 }
 0x2b7   : > { %870 = vmatprep.mubr.f32.mxu1 %v1937_v23  ;;  %1729 = vmatpush3.bf16.msra.mxu1 %v1726_v55  ;;  %v461_v23 = vpop.f32.mrb[0].mxu0 }
 0x2b8   : > { %1731 = vmatprep.subr.bf16.mxu1 %v1730_v63  ;;  %1719 = vmatprep.subr.bf16.mxu0 %v1718_v19  ;;  %v463_v25 = vpop.f32.mrb[1].mxu0  ;;  %v555_v39 = vadd.f32 %v550_v37, %v461_v23 }
 0x2b9   : > { %v1808_v0 = vpop.eup %1807  ;;  %v467_v24 = vpop.f32.mrb[2].mxu0  ;;  %v556_v40 = vadd.f32 %v554_v38, %v463_v25 }
 0x2ba   : > { %1410 = vmatmul.mubr.msk.f32.gmra.mrb[8].mxu1 %vm755_vm8, %v1808_v0  ;;  %v771_v1 = vsel %vm755_vm8, %v1808_v0, 0.0  ;;  %1721 = vmatpush3.bf16.msra.mxu0 %v1720_v22  ;;  %v469_v0 = vpop.f32.mrb[3].mxu0  ;;  %v557_v43 = vadd.f32 %v550_v37, %v467_v24  ;;  %v1944_v37 = vmov 1  }
 0x2bb   : > { %772 = vadd.xlane.f32.xlu1 %v771_v1  ;;  %1563 = vmatprep.mubr.msk.f32.mxu1 %vm1012_vm15, %v1002_v2  ;;  %v992_v1 = vsub.s32 4, %v2079_v35  ;;  %v558_v46 = vadd.f32 %v554_v38, %v469_v0 }
 0x2bc   : > { %1733 = vmatpush3.bf16.msra.mxu1 %v1730_v63  ;;  %1723 = vmatprep.subr.bf16.mxu0 %v1722_v28 }
 0x2bd   : > { %v993_v32 = vrot.slane %v2200_v14, %v992_v1  ;;  %1799 = vset.pattern.permute.xlu0 %v1944_v37  ;;  %1800 = vset.pattern.permute.xlu1 %v1944_v37 }
 0x2be   : > { %1725 = vmatpush3.bf16.msra.mxu0 %v1724_v31 }
 0x2bf   : > { %769 = vadd.xlane.f32.xlu1 %v768_v3  ;;  %1564 = vmatmul.mubr.msk.f32.vlgmr.msra.gmra.mrb[10].mxu1 %vm1012_vm15, %v1003_v10  ;;  %v1098_v3 = vsub.s32 5, %v2079_v35 }
 0x2c0   : > { %995 = vrot.lane.b32.xlu0 %v993_v32, %s1939_s14 }
 0x2c1   : > { %v1099_v33 = vrot.slane %v2200_v14, %v1098_v3 }
 0x2d0   : > { %1101 = vrot.lane.b32.xlu1 %v1099_v33, %s1939_s14  ;;  %s1865_s14 = scalar_lea.vmem %s2387_s19, 256 }
 0x2d1   : > { %p1866_p6 = scmp.ne.s32.totalorder %s2387_s19, %s1865_s14 }
 0x2d3   : > { %p1867_p10 = pnand %p1866_p6, %p2456_p9 }
 0x2d4   : > { %1127 = vrot.lane.b32.xlu1 %v1099_v33, %s1940_s13 }
 0x2d5   : > { %p1868_p12 = pneg %p1867_p10 }
 0x2d8   : > { %1148 = vrot.lane.b32.xlu1 %v1099_v33, %s1941_s29 }
 0x332   : > { %v996_v10 = vpop.permute.xlu0 %995 }
 0x348   : > { %v773_v56 = vpop.xlane.xlu1 %772 }
 0x349   : > { %v775_v5 = vadd.f32 1e-08, %v773_v56 }
 0x34c   : > { %v770_v58 = vpop.xlane.xlu1 %769 }
 0x34d   : > { %v774_v4 = vadd.f32 1e-08, %v770_v58 }
 0x350   : > { %v1102_v59 = vpop.permute.xlu1 %1101 }
 0x354   : > { %v1128_v62 = vpop.permute.xlu1 %1127 }
 0x358   : > { %v1149_v22 = vpop.permute.xlu1 %1148 }
 0x389   : > { %v866_v41 = vpop.f32.mrb[6].mxu1 }
 0x38a   : > { %v877_v42 = vmul.f32 %v866_v41, %v555_v39  ;;  %v868_v44 = vpop.f32.mrb[7].mxu1 }
 0x38b   : > { %v878_v45 = vmul.f32 %v868_v44, %v556_v40  ;;  %v1123_v40 = vsub.s32 6, %v2079_v35 }
 0x38d   : > { %v872_v47 = vpop.f32.mrb[8].mxu1  ;;  %977 = vmatprep.mubr.f32.mxu0 %v878_v45  ;;  %v1124_v41 = vrot.slane %v2200_v14, %v1123_v40 }
 0x38e   : > { %v879_v48 = vmul.f32 %v872_v47, %v557_v43  ;;  %v874_v49 = vpop.f32.mrb[9].mxu1  ;;  %978 = vmatmul.mubr.f32.vlgmr.msra.gmra.mrb[4].mxu0 %v877_v42 }
 0x38f   : > { %v880_v50 = vmul.f32 %v874_v49, %v558_v46 }
 0x391   : > { %982 = vmatprep.mubr.f32.mxu0 %v880_v50 }
 0x392   : > { %983 = vmatmul.mubr.f32.gmra.mrb[6].mxu0 %v879_v48  ;;  %v1565_v51 = vpop.f32.mrb[10].mxu1 }
 0x393   : > { %v1085_v52 = vpop.f32.mrb[11].mxu1  ;;  %v2349_v57 = vadd.f32 %v1565_v51, %v1011_v54 }
 0x394   : > { %v2347_v55 = vadd.f32 %v1085_v52, %v1011_v54 }
 0x396   : > { %1809 = vtanh.f32 %v2347_v55 }
 0x397   : > { %1811 = vtanh.f32 %v2349_v57 }
 0x398   : > { %1813 = vrcp.f32 %v774_v4 }
 0x399   : > { %1815 = vrcp.f32 %v775_v5 }
 0x3a0   : > { %v1810_v60 = vpop.eup %1809 }
 0x3a1   : > { %v1812_v61 = vpop.eup %1811  ;;  %v1130_v63 = vmul.f32 %v1810_v60, %v1128_v62  ;;  %v1151_v25 = vmul.f32 %v1810_v60, %v1149_v22 }
 0x3a2   : > { %v1131_v2 = vmul.f32 %v1812_v61, %v1128_v62  ;;  %v1814_v9 = vpop.eup %1813  ;;  %v1152_v27 = vmul.f32 %v1812_v61, %v1149_v22 }
 0x3a3   : > { %1134 = vrot.lane.b32.xlu0 %v1130_v63, %s1940_s13  ;;  %v1816_v17 = vpop.eup %1815 }
 0x3a4   : > { %1136 = vrot.lane.b32.xlu1 %v1131_v2, %s1940_s13  ;;  %s1945_s13 = smov [#allocation5]  }
 0x3a5   : > { %s1869_s29 = sshll.u32 %s1945_s13, 4  ;;  %s1870_s29 = int_to_ptr.vmem [resolvable:$false] %s1869_s29 }
 0x3a6   : > { %s1871_s11 = scalar_lea.vmem %s1870_s29, 512  ;;  %p1872_p2 = scmp.lt.s32.totalorder %s2387_s19, %s1870_s29 }
 0x3a7   : > { %p1873_p3 = scmp.lt.s32.totalorder %s1871_s11, %s1865_s14 }
 0x3a9   : > { %p1874_p4 = por %p1873_p3, %p1872_p2 }
 0x3ab   : > { %p1875_p7 = pnand %p1874_p4, %p1868_p12 }
 0x415   : > { %v1135_v28 = vpop.permute.xlu0 %1134 }
 0x416   : > { %v1140_v29 = vsel %vm1114_vm0, %v1135_v28, 0.0  ;;  %v1137_v30 = vpop.permute.xlu1 %1136 }
 0x417   : > { %v1143_v31 = vsel %vm1114_vm0, %v1137_v30, 0.0 }
 0x461   : > { %v1508_v6 = vpop.f32.mrb[4].mxu0 }
 0x462   : > { %v1509_v7 = vpop.f32.mrb[5].mxu0 }
 0x463   : > { %v1510_v8 = vadd.f32 %v1509_v7, %v1508_v6 }
 0x465   : > { %v2355_v11 = vmul.f32 %v1814_v9, %v1510_v8  ;;  %v1511_v12 = vpop.f32.mrb[6].mxu0 }
 0x466   : > { %v1512_v13 = vpop.f32.mrb[7].mxu0 }
 0x467   : > { %v998_v15 = vadd.f32 %v996_v10, %v2355_v11  ;;  %v1513_v16 = vadd.f32 %v1512_v13, %v1511_v12 }
 0x469   : > { %1817 = vtanh.f32 %v998_v15  ;;  %v2358_v18 = vmul.f32 %v1816_v17, %v1513_v16 }
 0x46b   : > { %v999_v19 = vadd.f32 %v996_v10, %v2358_v18 }
 0x46d   : > { %1819 = vtanh.f32 %v999_v19 }
 0x473   : > { %v1818_v20 = vpop.eup %1817 }
 0x474   : > { %v1104_v21 = vmul.f32 %v1818_v20, %v1102_v59 }
 0x476   : > { %1108 = vrot.lane.b32.xlu0 %v1104_v21, %s1942_s9 }
 0x477   : > { %v1820_v23 = vpop.eup %1819 }
 0x478   : > { %v1105_v26 = vmul.f32 %v1820_v23, %v1102_v59 }
 0x47a   : > { %1110 = vrot.lane.b32.xlu1 %v1105_v26, %s1942_s9  ;;  %1155 = vrot.lane.b32.xlu0 %v1151_v25, %s1943_s12 }
 0x47e   : > { %1157 = vrot.lane.b32.xlu1 %v1152_v27, %s1943_s12 }
 0x499   : > { %1141 = vadd.xlane.f32.xlu0 %v1140_v29 }
 0x49d   : > { %1144 = vadd.xlane.f32.xlu0 %v1143_v31 }
 0x4e8   : > { %v1109_v24 = vpop.permute.xlu0 %1108 }
 0x4e9   : > { %v1115_v0 = vsel %vm1114_vm0, %v1109_v24, 0.0 }
 0x4ea   : > { %1116 = vadd.xlane.f32.xlu0 %v1115_v0 }
 0x4ec   : > { %v1111_v1 = vpop.permute.xlu1 %1110  ;;  %v1156_v3 = vpop.permute.xlu0 %1155 }
 0x4ed   : > { %v1118_v32 = vsel %vm1114_vm0, %v1111_v1, 0.0  ;;  %v1161_v33 = vsel %vm1114_vm0, %v1156_v3, 0.0 }
 0x4ee   : > { %1119 = vadd.xlane.f32.xlu1 %v1118_v32  ;;  %1162 = vadd.xlane.f32.xlu0 %v1161_v33 }
 0x4f0   : > { %v1158_v34 = vpop.permute.xlu1 %1157 }
 0x4f1   : > { %v1164_v36 = vsel %vm1114_vm0, %v1158_v34, 0.0 }
 0x4f2   : > { %1165 = vadd.xlane.f32.xlu1 %v1164_v36 }
 0x526   : > { %v1142_v38 = vpop.xlane.xlu0 %1141 }
 0x527   : > { %v1146_v44 = vadd.f32 %v1142_v38, %v1124_v41 }
 0x52a   : > { %v1145_v39 = vpop.xlane.xlu0 %1144 }
 0x52b   : > { %v1147_v50 = vadd.f32 %v1145_v39, %v1124_v41 }
 0x577   : > { %v1117_v42 = vpop.xlane.xlu0 %1116 }
 0x578   : > { %v1125_v43 = vadd.f32 %v1124_v41, %v1117_v42 }
 0x57a   : > { %v1169_v47 = vmax.f32 %v1125_v43, %v1146_v44 }
 0x57b   : > { %v1120_v45 = vpop.xlane.xlu1 %1119  ;;  %v1163_v46 = vpop.xlane.xlu0 %1162 }
 0x57c   : > { %v1126_v48 = vadd.f32 %v1124_v41, %v1120_v45  ;;  %v1167_v49 = vadd.f32 %v1163_v46, %v1124_v41 }
 0x57e   : > { %v1171_v51 = vmax.f32 %v1169_v47, %v1167_v49  ;;  %v1170_v53 = vmax.f32 %v1126_v48, %v1147_v50 }
 0x57f   : > { %v1166_v52 = vpop.xlane.xlu1 %1165 }
 0x580   : > { %v1173_v54 = vsub.f32 %v1125_v43, %v1171_v51  ;;  %v1185_v56 = vsub.f32 %v1167_v49, %v1171_v51  ;;  %v1168_v58 = vadd.f32 %v1166_v52, %v1124_v41  ;;  %v1179_v59 = vsub.f32 %v1146_v44, %v1171_v51 }
 0x582   : > { %v1187_v60 = vmul.f32 1.442695, %v1185_v56  ;;  %v1172_v35 = vmax.f32 %v1170_v53, %v1168_v58  ;;  %v1175_v61 = vmul.f32 1.442695, %v1173_v54  ;;  %v1181_v62 = vmul.f32 1.442695, %v1179_v59 }
 0x584   : > { %v1186_v14 = vsub.f32 %v1168_v58, %v1172_v35  ;;  %v1174_v63 = vsub.f32 %v1126_v48, %v1172_v35  ;;  %1821 = vpow2.f32 %v1187_v60  ;;  %v1180_v2 = vsub.f32 %v1147_v50, %v1172_v35 }
 0x585   : > { %1823 = vpow2.f32 %v1175_v61 }
 0x586   : > { %v1189_v4 = vmul.f32 1.442695, %v1186_v14  ;;  %1825 = vpow2.f32 %v1181_v62  ;;  %v1177_v5 = vmul.f32 1.442695, %v1174_v63  ;;  %v1183_v6 = vmul.f32 1.442695, %v1180_v2 }
 0x588   : > { %1827 = vpow2.f32 %v1189_v4 }
 0x589   : > { %1829 = vpow2.f32 %v1177_v5 }
 0x58a   : > { %1831 = vpow2.f32 %v1183_v6 }
 0x58e   : > { %v1822_v7 = vpop.eup %1821 }
 0x58f   : > { %1225 = vperm.xlu0 %1799, %v1822_v7   ;;  %v1824_v8 = vpop.eup %1823 }
 0x590   : > { %v1826_v9 = vpop.eup %1825 }
 0x591   : > { %v1191_v13 = vadd.f32 %v1826_v9, %v1824_v8 }
 0x592   : > { %v1828_v10 = vpop.eup %1827 }
 0x593   : > { %1230 = vperm.xlu1 %1800, %v1828_v10   ;;  %v1830_v12 = vpop.eup %1829  ;;  %v1193_v16 = vadd.f32 %v1822_v7, %v1191_v13 }
 0x594   : > { %v1832_v15 = vpop.eup %1831 }
 0x595   : > { %v1192_v17 = vadd.f32 %v1832_v15, %v1830_v12  ;;  %v1195_v19 = vadd.f32 1e-08, %v1193_v16 }
 0x597   : > { %1199 = vperm.xlu1 %1800, %v1824_v8   ;;  %v1194_v20 = vadd.f32 %v1828_v10, %v1192_v17 }
 0x599   : > { %v1196_v21 = vadd.f32 1e-08, %v1194_v20 }
 0x59b   : > { %1204 = vperm.xlu1 %1800, %v1830_v12  }
 0x59f   : > { %1247 = vperm.xlu1 %1800, %v1195_v19  }
 0x5a3   : > { %1252 = vperm.xlu1 %1800, %v1196_v21  }
 0x5a7   : > { %1211 = vperm.xlu1 %1800, %v1826_v9  }
 0x5ab   : > { %1216 = vperm.xlu1 %1800, %v1832_v15  }
 0x60e   : > { %v1226_v22 = vpop.permute.xlu0 %1225 }
 0x60f   : > { %v1233_v23 = vmul.f32 %v1226_v22, %v2347_v55 }
 0x611   : > { %1237 = vrot.lane.b32.xlu1 %v1233_v23, %s1942_s9 }
 0x612   : > { %v1231_v25 = vpop.permute.xlu1 %1230 }
 0x613   : > { %v1234_v26 = vmul.f32 %v1231_v25, %v2349_v57 }
 0x615   : > { %1239 = vrot.lane.b32.xlu0 %v1234_v26, %s1942_s9 }
 0x616   : > { %v1200_v27 = vpop.permute.xlu1 %1199 }
 0x617   : > { %v1207_v1 = vmul.f32 %v1200_v27, %v2355_v11 }
 0x61a   : > { %v1205_v28 = vpop.permute.xlu1 %1204 }
 0x61b   : > { %v1208_v34 = vmul.f32 %v1205_v28, %v2358_v18 }
 0x61e   : > { %v1248_v29 = vpop.permute.xlu1 %1247 }
 0x61f   : > { %1833 = vrcp.f32 %v1248_v29 }
 0x622   : > { %v1253_v30 = vpop.permute.xlu1 %1252 }
 0x623   : > { %1835 = vrcp.f32 %v1253_v30 }
 0x626   : > { %v1212_v31 = vpop.permute.xlu1 %1211 }
 0x627   : > { %v1219_v24 = vmul.f32 %v1212_v31, %v2347_v55 }
 0x629   : > { %v1221_v32 = vadd.f32 %v1219_v24, %v1207_v1  ;;  %v1834_v37 = vpop.eup %1833 }
 0x62a   : > { %v1217_v0 = vpop.permute.xlu1 %1216 }
 0x62b   : > { %v1220_v3 = vmul.f32 %v1217_v0, %v2349_v57 }
 0x62d   : > { %v1222_v39 = vadd.f32 %v1220_v3, %v1208_v34  ;;  %v1836_v11 = vpop.eup %1835 }
 0x683   : > { %v1238_v33 = vpop.permute.xlu1 %1237 }
 0x684   : > { %v1243_v36 = vadd.f32 %v1238_v33, %v1221_v32 }
 0x686   : > { %v1256_v38 = vmul.f32 %v1834_v37, %v1243_v36 }
 0x687   : > { %v1240_v55 = vpop.permute.xlu0 %1239 }
 0x688   : > { %1259 = vst.msk [vmem:[%s278_s18] sm:$0xff] %vm1012_vm15, %v1256_v38  ;;  %v1244_v40 = vadd.f32 %v1240_v55, %v1222_v39 }
 0x68a   : > { %v1258_v57 = vmul.f32 %v1836_v11, %v1244_v40 }
 0x68c   : > { %1260 = vst.msk [vmem:[%s278_s18 + $0x8] sm:$0xff] %vm1012_vm15, %v1258_v57 }
 0x68d   : > { %1878 = shalt.err (!%p1875_p7)
}
 0x68e   : > { %s1879_s10 = scalar_lea.hbm %s2385_s28, 256  ;;  %s1883_s15 = scalar_lea.hbm %s2437_s6, 512 }
 0x68f   : > { %p1880_p8 = scmp.ne.s32.totalorder %s2385_s28, %s1879_s10  ;;  %p1884_p1 = scmp.lt.u32.totalorder %s2385_s28, %s2437_s6 }
 0x690   : > { %p1885_p0 = scmp.lt.u32.totalorder %s1883_s15, %s1879_s10  ;;  %p1887_p6 = scmp.lt.u32.totalorder %s1879_s10, %s2385_s28 }
 0x691   : > { %p1881_p11 = pnand %p1880_p8, %p2456_p9 }
 0x692   : > { %p1886_p5 = por %p1885_p0, %p1884_p1 }
 0x693   : > { %p1882_p13 = pneg %p1881_p11 }
 0x694   : > { %p1888_p10 = por %p1887_p6, %p1886_p5 }
 0x696   : > { %p1889_p12 = pnand %p1888_p10, %p1882_p13 }
 0x698   : > { %1892 = shalt.err (!%p1889_p12)
}
 0x699   : > { %s1946_s18 = smov 128   ;;  %s1947_s20 = smov 8  }
 0x69a   : > { %1740 = dma.vmem_to_hbm [thread:$0]  (%p2456_p9), %s2387_s19, 256, %s2385_s28, %s2390_s25, %s1946_s18, %s1946_s18, %s1947_s20  }
 0x69b PF: > { %p1752_p2 = scmp.ge.s32.totalorder %s1931_s24, 2  ;;  %s1290_s26 = sand.u32 1, %s1919_s21  }
 0x69c   : > { %p2457_p3 = scmp.ne.s32.totalorder %s2442_s8, 0  ;;  %s1291_s14 = scalar_lea.sflag [#allocation4], %s1290_s26 }
 0x69e   : > { %p1747_p4 = pnand %p1752_p2, %p2457_p3 }
 0x6a0   : > { %1914 = dma.done.wait (!%p1747_p4), %s1291_s14, 256  }
 0x6a1   : > { %1916 = vsyncadd (!%p1747_p4), %s1291_s14, 4294967040  ;;  %p17_p7 = scmp.ge.s32.totalorder %s2008_s27, 4   ;;  %s2458_s21 = smov %s1923_s22 }
 0x6a2   : > { %s2459_s22 = smov %s1927_s23  ;;  %s2460_s23 = smov %s2019_s30 }
 0x6a3   : > { %s2461_s24 = smov %s2008_s27  ;;  %19 = sbr.rel (!%p17_p7) target bundleno = 4 (0x4), region = 87 }
 0x6aa   :  { %1296 = vsyncpa [#allocation3], 1 }
 0x6ab   :  { %1298 = vsyncpa [#allocation3 + $0x1], 1 }
 0x6ac   :  { %1299 = vsyncpa [#allocation4], 1 }
 0x6ad   :  { %1301 = vsyncpa [#allocation4 + $0x1], 1 }

</bundles_post_ra>
